<compile_context>
chip_gen: v7x
topology: tpu7x:2x2x1
jax: 0.10.0
libtpu: 0.0.40
codegen_flags: <defaults>
</compile_context>

<pallas_src>
import math

import jax
import jax.numpy as jnp
from jax import lax
from jax.experimental import pallas as pl
from jax.experimental.pallas import tpu as pltpu


def _layernorm(x, gamma, beta, eps=1e-5):
    mean = jnp.mean(x, axis=-1, keepdims=True)
    var = jnp.mean((x - mean) ** 2, axis=-1, keepdims=True)
    return (x - mean) * lax.rsqrt(var + eps) * gamma + beta


def _gelu_exact(x):
    # PyTorch nn.GELU() default (approximate='none'): 0.5*x*(1+erf(x/sqrt(2)))
    return 0.5 * x * (1.0 + lax.erf(x * (1.0 / math.sqrt(2.0))))


def block_kernel(x_full_ref, x_q_ref, bias_ref,
                 ln1_g_ref, ln1_b_ref,
                 q_w_ref, q_b_ref, k_w_ref, k_b_ref, v_w_ref, v_b_ref,
                 out_w_ref, out_b_ref,
                 ln2_g_ref, ln2_b_ref,
                 fc_w_ref, fc_b_ref, pr_w_ref, pr_b_ref,
                 o_ref):
    bf16 = jnp.bfloat16
    f32 = jnp.float32

    x_full = x_full_ref[0]            # (T, E)  f32  — full sequence (K/V source)
    x_q = x_q_ref[0]                  # (tq, E) f32  — query tile
    bias = bias_ref[...]              # (tq, T) f32  — additive mask (0 / -1e30)

    H, _, hd = q_w_ref.shape
    scale = 1.0 / math.sqrt(hd)

    # ---- ln_1 (f32) ----
    ln1_g = ln1_g_ref[...]
    ln1_b = ln1_b_ref[...]
    xn_full = _layernorm(x_full, ln1_g, ln1_b).astype(bf16)      # (T, E)  bf16
    xn_q = _layernorm(x_q, ln1_g, ln1_b).astype(bf16)            # (tq, E) bf16

    # ---- multi-head self-attention (head-major weight slabs, no concat) ----
    attn = jnp.zeros(x_q.shape, f32)                             # (tq, E) f32 acc
    for h in range(H):                                           # static unroll
        q_h = jnp.dot(xn_q, q_w_ref[h],
                      preferred_element_type=f32) + q_b_ref[h]   # (tq, hd)
        k_h = jnp.dot(xn_full, k_w_ref[h],
                      preferred_element_type=f32) + k_b_ref[h]   # (T, hd)
        v_h = jnp.dot(xn_full, v_w_ref[h],
                      preferred_element_type=f32) + v_b_ref[h]   # (T, hd)

        q_h = (q_h * scale).astype(bf16)
        k_h = k_h.astype(bf16)
        v_h = v_h.astype(bf16)

        # scores: contract the last dims of both operands (no in-kernel .T)
        s = lax.dot_general(q_h, k_h, (((1,), (1,)), ((), ())),
                            preferred_element_type=f32)          # (tq, T)
        s = s + bias
        s = s - jnp.max(s, axis=-1, keepdims=True)
        p = jnp.exp(s)
        p = p * pl.reciprocal(jnp.sum(p, axis=-1, keepdims=True), approx=True)

        o_h = jnp.dot(p.astype(bf16), v_h,
                      preferred_element_type=f32)                # (tq, hd)
        # per-head slice of the output projection: accumulate, no concat
        attn += jnp.dot(o_h.astype(bf16), out_w_ref[h],
                        preferred_element_type=f32)              # (tq, E)
    attn = attn + out_b_ref[...]

    x1 = x_q + attn                                              # residual 1

    # ---- ln_2 + MLP ----
    xn2 = _layernorm(x1, ln2_g_ref[...], ln2_b_ref[...]).astype(bf16)
    h1 = jnp.dot(xn2, fc_w_ref[...],
                 preferred_element_type=f32) + fc_b_ref[...]     # (tq, 4E)
    g = _gelu_exact(h1).astype(bf16)
    y = jnp.dot(g, pr_w_ref[...],
                preferred_element_type=f32) + pr_b_ref[...]      # (tq, E)

    o_ref[0] = (x1 + y).astype(o_ref.dtype)                      # residual 2


def block_forward(x, mask, params, n_head, tq=None):
    """x: (B, T, E) f32, mask: (T, T) bool (True = allowed to attend)."""
    B, T, E = x.shape
    H = n_head
    assert E % H == 0
    hd = E // H
    if tq is None:
        tq = T if T <= 128 else 128
    assert T % tq == 0 and (tq == T or tq % 8 == 0)
    n_q = T // tq

    f32, bf16 = jnp.float32, jnp.bfloat16
    p = params

    # --- one-time host-side weight layout plumbing (all transposes here) ---
    in_w = p["in_w"]                                  # (3E, E), torch layout

    def head_major(w_out_in):                         # (E, E) -> (H, E_in, hd)
        return jnp.transpose(w_out_in.reshape(H, hd, E), (0, 2, 1)).astype(bf16)

    q_w = head_major(in_w[0 * E:1 * E])
    k_w = head_major(in_w[1 * E:2 * E])
    v_w = head_major(in_w[2 * E:3 * E])
    in_b = p["in_b"].reshape(3 * E).astype(f32)
    q_b = in_b[0 * E:1 * E].reshape(H, 1, hd)
    k_b = in_b[1 * E:2 * E].reshape(H, 1, hd)
    v_b = in_b[2 * E:3 * E].reshape(H, 1, hd)

    out_w = jnp.transpose(p["out_w"]).reshape(H, hd, E).astype(bf16)  # (H, hd, E)
    out_b = p["out_b"].reshape(1, E).astype(f32)

    fc_wt = jnp.transpose(p["fc_w"]).astype(bf16)     # (E, 4E)
    fc_b = p["fc_b"].reshape(1, 4 * E).astype(f32)
    pr_wt = jnp.transpose(p["pr_w"]).astype(bf16)     # (4E, E)
    pr_b = p["pr_b"].reshape(1, E).astype(f32)

    ln1_g = p["ln1_g"].reshape(1, E).astype(f32)
    ln1_b = p["ln1_b"].reshape(1, E).astype(f32)
    ln2_g = p["ln2_g"].reshape(1, E).astype(f32)
    ln2_b = p["ln2_b"].reshape(1, E).astype(f32)

    # mask -> additive f32 bias (0 = allowed, -1e30 = disallowed)
    bias = jnp.where(mask, 0.0, -1e30).astype(f32)    # (T, T)

    const_args = (ln1_g, ln1_b,
                  q_w, q_b, k_w, k_b, v_w, v_b,
                  out_w, out_b,
                  ln2_g, ln2_b,
                  fc_wt, fc_b, pr_wt, pr_b)

    def _const_spec(a):
        nd = a.ndim
        return pl.BlockSpec(a.shape, lambda *_: (0,) * nd)

    x = x.astype(f32)
    # TODO(synk): for production E/T (E a multiple of 128, large T), add a
    # K/V-precompute pass + online-softmax over KV tiles so the full (T, E)
    # sequence need not be resident; at these shapes it fits comfortably.
    return pl.pallas_call(
        block_kernel,
        out_shape=jax.ShapeDtypeStruct((B, T, E), f32),
        grid=(B, n_q),
        in_specs=[
            pl.BlockSpec((1, T, E), lambda b, q: (b, 0, 0)),    # full seq (K/V)
            pl.BlockSpec((1, tq, E), lambda b, q: (b, q, 0)),   # query tile
            pl.BlockSpec((tq, T), lambda b, q: (q, 0)),         # mask bias tile
        ] + [_const_spec(a) for a in const_args],
        out_specs=pl.BlockSpec((1, tq, E), lambda b, q: (b, q, 0)),
        compiler_params=pltpu.CompilerParams(
            dimension_semantics=("parallel", "parallel"),
            vmem_limit_bytes=48 * 1024 * 1024),
    )(x, x, bias, *const_args)


# ------------------------- pure-JAX f32 reference -------------------------
def block_ref(x, mask, params, n_head):
    B, T, E = x.shape
    H = n_head
    hd = E // H
    p = params

    def ln(z, g, b):
        m = z.mean(-1, keepdims=True)
        v = ((z - m) ** 2).mean(-1, keepdims=True)
        return (z - m) / jnp.sqrt(v + 1e-5) * g[0] + b[0]

    xn = ln(x, p["ln1_g"], p["ln1_b"])
    qkv = xn @ p["in_w"].T + p["in_b"][0]
    q, k, v = jnp.split(qkv, 3, axis=-1)
    q = q.reshape(B, T, H, hd).transpose(0, 2, 1, 3) / math.sqrt(hd)
    k = k.reshape(B, T, H, hd).transpose(0, 2, 1, 3)
    v = v.reshape(B, T, H, hd).transpose(0, 2, 1, 3)
    s = jnp.einsum("bhqd,bhkd->bhqk", q, k)
    s = jnp.where(mask[None, None], s, -jnp.inf)
    a = jax.nn.softmax(s, axis=-1)
    o = jnp.einsum("bhqk,bhkd->bhqd", a, v).transpose(0, 2, 1, 3).reshape(B, T, E)
    o = o @ p["out_w"].T + p["out_b"][0]
    x1 = x + o

    xn2 = ln(x1, p["ln2_g"], p["ln2_b"])
    h1 = xn2 @ p["fc_w"].T + p["fc_b"][0]
    g = 0.5 * h1 * (1.0 + lax.erf(h1 / math.sqrt(2.0)))
    y = g @ p["pr_w"].T + p["pr_b"][0]
    return x1 + y


# ------------------------------ main ------------------------------
if __name__ == "__main__":
    B, T, E, H = 2, 8, 32, 4
    key = jax.random.PRNGKey(0)
    ks = jax.random.split(key, 12)

    def w(k, shape, scale=0.02):
        return (scale * jax.random.normal(k, shape)).astype(jnp.float32)

    params = {
        "ln1_g": jnp.ones((1, E), jnp.float32),
        "ln1_b": jnp.zeros((1, E), jnp.float32),
        "in_w":  w(ks[0], (3 * E, E)),
        "in_b":  w(ks[1], (1, 3 * E)),
        "out_w": w(ks[2], (E, E)),
        "out_b": w(ks[3], (1, E)),
        "ln2_g": jnp.ones((1, E), jnp.float32),
        "ln2_b": jnp.zeros((1, E), jnp.float32),
        "fc_w":  w(ks[4], (4 * E, E)),
        "fc_b":  w(ks[5], (1, 4 * E)),
        "pr_w":  w(ks[6], (E, 4 * E)),
        "pr_b":  w(ks[7], (1, E)),
    }

    x = jax.random.normal(ks[8], (B, T, E), jnp.float32)
    # Causal mask: True = allowed to attend (PyTorch call passes ~mask).
    mask = jnp.tril(jnp.ones((T, T), dtype=bool))

    out = jax.block_until_ready(block_forward(x, mask, params, H))
    ref = jax.block_until_ready(block_ref(x, mask, params, H))

    assert out.shape == (B, T, E)
    # bf16 MXU operands vs f32 reference -> relaxed tolerance.
    assert jnp.allclose(out, ref, rtol=2e-2, atol=2e-2), \
        f"max abs diff {jnp.max(jnp.abs(out - ref))}"
    print("KERNEL_OK")
</pallas_src>

<mosaic_0001>
module attributes {stable_mosaic.version = 11 : i64} {
  func.func @block_kernel(%arg0: i32, %arg1: i32, %arg2: memref<1x8x32xf32, #tpu.memory_space<vmem>>, %arg3: memref<1x8x32xf32, #tpu.memory_space<vmem>>, %arg4: memref<8x8xf32, #tpu.memory_space<vmem>>, %arg5: memref<1x32xf32, #tpu.memory_space<vmem>>, %arg6: memref<1x32xf32, #tpu.memory_space<vmem>>, %arg7: memref<4x32x8xbf16, #tpu.memory_space<vmem>>, %arg8: memref<4x1x8xf32, #tpu.memory_space<vmem>>, %arg9: memref<4x32x8xbf16, #tpu.memory_space<vmem>>, %arg10: memref<4x1x8xf32, #tpu.memory_space<vmem>>, %arg11: memref<4x32x8xbf16, #tpu.memory_space<vmem>>, %arg12: memref<4x1x8xf32, #tpu.memory_space<vmem>>, %arg13: memref<4x8x32xbf16, #tpu.memory_space<vmem>>, %arg14: memref<1x32xf32, #tpu.memory_space<vmem>>, %arg15: memref<1x32xf32, #tpu.memory_space<vmem>>, %arg16: memref<1x32xf32, #tpu.memory_space<vmem>>, %arg17: memref<32x128xbf16, #tpu.memory_space<vmem>>, %arg18: memref<1x128xf32, #tpu.memory_space<vmem>>, %arg19: memref<128x32xbf16, #tpu.memory_space<vmem>>, %arg20: memref<1x32xf32, #tpu.memory_space<vmem>>, %arg21: memref<1x8x32xf32, #tpu.memory_space<vmem>>) attributes {dimension_semantics = [#tpu.dimension_semantics<parallel>, #tpu.dimension_semantics<parallel>], iteration_bounds = array<i64: 2, 1>, scalar_prefetch = 0 : i64, scratch_operands = 0 : i64, tpu.core_type = #tpu.core_type<tc>, window_params = [{transform_indices = @transform_0, window_bounds = array<i64: 1, 8, 32>}, {transform_indices = @transform_1, window_bounds = array<i64: 1, 8, 32>}, {transform_indices = @transform_2, window_bounds = array<i64: 8, 8>}, {pipeline_mode = #tpu.pipeline_mode<synchronous>, transform_indices = @transform_3, window_bounds = array<i64: 1, 32>}, {pipeline_mode = #tpu.pipeline_mode<synchronous>, transform_indices = @transform_4, window_bounds = array<i64: 1, 32>}, {pipeline_mode = #tpu.pipeline_mode<synchronous>, transform_indices = @transform_5, window_bounds = array<i64: 4, 32, 8>}, {pipeline_mode = #tpu.pipeline_mode<synchronous>, transform_indices = @transform_6, window_bounds = array<i64: 4, 1, 8>}, {pipeline_mode = #tpu.pipeline_mode<synchronous>, transform_indices = @transform_7, window_bounds = array<i64: 4, 32, 8>}, {pipeline_mode = #tpu.pipeline_mode<synchronous>, transform_indices = @transform_8, window_bounds = array<i64: 4, 1, 8>}, {pipeline_mode = #tpu.pipeline_mode<synchronous>, transform_indices = @transform_9, window_bounds = array<i64: 4, 32, 8>}, {pipeline_mode = #tpu.pipeline_mode<synchronous>, transform_indices = @transform_10, window_bounds = array<i64: 4, 1, 8>}, {pipeline_mode = #tpu.pipeline_mode<synchronous>, transform_indices = @transform_11, window_bounds = array<i64: 4, 8, 32>}, {pipeline_mode = #tpu.pipeline_mode<synchronous>, transform_indices = @transform_12, window_bounds = array<i64: 1, 32>}, {pipeline_mode = #tpu.pipeline_mode<synchronous>, transform_indices = @transform_13, window_bounds = array<i64: 1, 32>}, {pipeline_mode = #tpu.pipeline_mode<synchronous>, transform_indices = @transform_14, window_bounds = array<i64: 1, 32>}, {pipeline_mode = #tpu.pipeline_mode<synchronous>, transform_indices = @transform_15, window_bounds = array<i64: 32, 128>}, {pipeline_mode = #tpu.pipeline_mode<synchronous>, transform_indices = @transform_16, window_bounds = array<i64: 1, 128>}, {pipeline_mode = #tpu.pipeline_mode<synchronous>, transform_indices = @transform_17, window_bounds = array<i64: 128, 32>}, {pipeline_mode = #tpu.pipeline_mode<synchronous>, transform_indices = @transform_18, window_bounds = array<i64: 1, 32>}, {transform_indices = @transform_19, window_bounds = array<i64: 1, 8, 32>}]} {
    %c0 = arith.constant 0 : index
    %c0_0 = arith.constant 0 : index
    %c0_1 = arith.constant 0 : index
    %0 = vector.load %arg2[%c0, %c0_0, %c0_1] : memref<1x8x32xf32, #tpu.memory_space<vmem>>, vector<1x8x32xf32>
    %1 = vector.shape_cast %0 : vector<1x8x32xf32> to vector<8x32xf32>
    %c0_2 = arith.constant 0 : index
    %c0_3 = arith.constant 0 : index
    %c0_4 = arith.constant 0 : index
    %2 = vector.load %arg3[%c0_2, %c0_3, %c0_4] : memref<1x8x32xf32, #tpu.memory_space<vmem>>, vector<1x8x32xf32>
    %3 = vector.shape_cast %2 : vector<1x8x32xf32> to vector<8x32xf32>
    %c0_5 = arith.constant 0 : index
    %c0_6 = arith.constant 0 : index
    %4 = vector.load %arg4[%c0_5, %c0_6] : memref<8x8xf32, #tpu.memory_space<vmem>>, vector<8x8xf32>
    %c0_7 = arith.constant 0 : index
    %c0_8 = arith.constant 0 : index
    %5 = vector.load %arg5[%c0_7, %c0_8] : memref<1x32xf32, #tpu.memory_space<vmem>>, vector<1x32xf32>
    %c0_9 = arith.constant 0 : index
    %c0_10 = arith.constant 0 : index
    %6 = vector.load %arg6[%c0_9, %c0_10] : memref<1x32xf32, #tpu.memory_space<vmem>>, vector<1x32xf32>
    %cst = arith.constant dense<0.000000e+00> : vector<8xf32>
    %7 = vector.multi_reduction <add>, %1, %cst [1] : vector<8x32xf32> to vector<8xf32>
    %8 = vector.shape_cast %7 : vector<8xf32> to vector<8x1xf32>
    %cst_11 = arith.constant 3.200000e+01 : f32
    %9 = vector.broadcast %cst_11 : f32 to vector<8x1xf32>
    %10 = arith.divf %8, %9 : vector<8x1xf32>
    %11 = vector.broadcast %10 : vector<8x1xf32> to vector<8x32xf32>
    %12 = arith.subf %1, %11 : vector<8x32xf32>
    %13 = arith.mulf %12, %12 : vector<8x32xf32>
    %cst_12 = arith.constant dense<0.000000e+00> : vector<8xf32>
    %14 = vector.multi_reduction <add>, %13, %cst_12 [1] : vector<8x32xf32> to vector<8xf32>
    %15 = vector.shape_cast %14 : vector<8xf32> to vector<8x1xf32>
    %cst_13 = arith.constant 3.200000e+01 : f32
    %16 = vector.broadcast %cst_13 : f32 to vector<8x1xf32>
    %17 = arith.divf %15, %16 : vector<8x1xf32>
    %18 = vector.broadcast %10 : vector<8x1xf32> to vector<8x32xf32>
    %19 = arith.subf %1, %18 : vector<8x32xf32>
    %cst_14 = arith.constant 9.99999974E-6 : f32
    %20 = vector.broadcast %cst_14 : f32 to vector<8x1xf32>
    %21 = arith.addf %17, %20 : vector<8x1xf32>
    %22 = math.rsqrt %21 : vector<8x1xf32>
    %23 = vector.broadcast %22 : vector<8x1xf32> to vector<8x32xf32>
    %24 = arith.mulf %19, %23 : vector<8x32xf32>
    %25 = vector.broadcast %5 : vector<1x32xf32> to vector<8x32xf32>
    %26 = arith.mulf %24, %25 : vector<8x32xf32>
    %27 = vector.broadcast %6 : vector<1x32xf32> to vector<8x32xf32>
    %28 = arith.addf %26, %27 : vector<8x32xf32>
    %29 = arith.truncf %28 : vector<8x32xf32> to vector<8x32xbf16>
    %cst_15 = arith.constant dense<0.000000e+00> : vector<8xf32>
    %30 = vector.multi_reduction <add>, %3, %cst_15 [1] : vector<8x32xf32> to vector<8xf32>
    %31 = vector.shape_cast %30 : vector<8xf32> to vector<8x1xf32>
    %cst_16 = arith.constant 3.200000e+01 : f32
    %32 = vector.broadcast %cst_16 : f32 to vector<8x1xf32>
    %33 = arith.divf %31, %32 : vector<8x1xf32>
    %34 = vector.broadcast %33 : vector<8x1xf32> to vector<8x32xf32>
    %35 = arith.subf %3, %34 : vector<8x32xf32>
    %36 = arith.mulf %35, %35 : vector<8x32xf32>
    %cst_17 = arith.constant dense<0.000000e+00> : vector<8xf32>
    %37 = vector.multi_reduction <add>, %36, %cst_17 [1] : vector<8x32xf32> to vector<8xf32>
    %38 = vector.shape_cast %37 : vector<8xf32> to vector<8x1xf32>
    %cst_18 = arith.constant 3.200000e+01 : f32
    %39 = vector.broadcast %cst_18 : f32 to vector<8x1xf32>
    %40 = arith.divf %38, %39 : vector<8x1xf32>
    %41 = vector.broadcast %33 : vector<8x1xf32> to vector<8x32xf32>
    %42 = arith.subf %3, %41 : vector<8x32xf32>
    %cst_19 = arith.constant 9.99999974E-6 : f32
    %43 = vector.broadcast %cst_19 : f32 to vector<8x1xf32>
    %44 = arith.addf %40, %43 : vector<8x1xf32>
    %45 = math.rsqrt %44 : vector<8x1xf32>
    %46 = vector.broadcast %45 : vector<8x1xf32> to vector<8x32xf32>
    %47 = arith.mulf %42, %46 : vector<8x32xf32>
    %48 = vector.broadcast %5 : vector<1x32xf32> to vector<8x32xf32>
    %49 = arith.mulf %47, %48 : vector<8x32xf32>
    %50 = vector.broadcast %6 : vector<1x32xf32> to vector<8x32xf32>
    %51 = arith.addf %49, %50 : vector<8x32xf32>
    %52 = arith.truncf %51 : vector<8x32xf32> to vector<8x32xbf16>
    %cst_20 = arith.constant 0.000000e+00 : f32
    %53 = vector.broadcast %cst_20 : f32 to vector<8x32xf32>
    %c0_21 = arith.constant 0 : index
    %c0_22 = arith.constant 0 : index
    %c0_23 = arith.constant 0 : index
    %54 = vector.load %arg7[%c0_21, %c0_22, %c0_23] : memref<4x32x8xbf16, #tpu.memory_space<vmem>>, vector<1x32x8xbf16>
    %55 = vector.shape_cast %54 : vector<1x32x8xbf16> to vector<32x8xbf16>
    %cst_24 = arith.constant dense<0.000000e+00> : vector<8x8xf32>
    %56 = tpu.matmul %52, %55, %cst_24 {dimension_numbers = #tpu.dot_dimension_numbers<[1], [0], [0], [1], [0, 0, 1, 1], [], []>} : vector<8x32xbf16>, vector<32x8xbf16>, vector<8x8xf32> -> vector<8x8xf32>
    %c0_25 = arith.constant 0 : index
    %c0_26 = arith.constant 0 : index
    %c0_27 = arith.constant 0 : index
    %57 = vector.load %arg8[%c0_25, %c0_26, %c0_27] : memref<4x1x8xf32, #tpu.memory_space<vmem>>, vector<1x1x8xf32>
    %58 = vector.shape_cast %57 : vector<1x1x8xf32> to vector<1x8xf32>
    %59 = vector.broadcast %58 : vector<1x8xf32> to vector<8x8xf32>
    %60 = arith.addf %56, %59 : vector<8x8xf32>
    %c0_28 = arith.constant 0 : index
    %c0_29 = arith.constant 0 : index
    %c0_30 = arith.constant 0 : index
    %61 = vector.load %arg9[%c0_28, %c0_29, %c0_30] : memref<4x32x8xbf16, #tpu.memory_space<vmem>>, vector<1x32x8xbf16>
    %62 = vector.shape_cast %61 : vector<1x32x8xbf16> to vector<32x8xbf16>
    %cst_31 = arith.constant dense<0.000000e+00> : vector<8x8xf32>
    %63 = tpu.matmul %29, %62, %cst_31 {dimension_numbers = #tpu.dot_dimension_numbers<[1], [0], [0], [1], [0, 0, 1, 1], [], []>} : vector<8x32xbf16>, vector<32x8xbf16>, vector<8x8xf32> -> vector<8x8xf32>
    %c0_32 = arith.constant 0 : index
    %c0_33 = arith.constant 0 : index
    %c0_34 = arith.constant 0 : index
    %64 = vector.load %arg10[%c0_32, %c0_33, %c0_34] : memref<4x1x8xf32, #tpu.memory_space<vmem>>, vector<1x1x8xf32>
    %65 = vector.shape_cast %64 : vector<1x1x8xf32> to vector<1x8xf32>
    %66 = vector.broadcast %65 : vector<1x8xf32> to vector<8x8xf32>
    %67 = arith.addf %63, %66 : vector<8x8xf32>
    %c0_35 = arith.constant 0 : index
    %c0_36 = arith.constant 0 : index
    %c0_37 = arith.constant 0 : index
    %68 = vector.load %arg11[%c0_35, %c0_36, %c0_37] : memref<4x32x8xbf16, #tpu.memory_space<vmem>>, vector<1x32x8xbf16>
    %69 = vector.shape_cast %68 : vector<1x32x8xbf16> to vector<32x8xbf16>
    %cst_38 = arith.constant dense<0.000000e+00> : vector<8x8xf32>
    %70 = tpu.matmul %29, %69, %cst_38 {dimension_numbers = #tpu.dot_dimension_numbers<[1], [0], [0], [1], [0, 0, 1, 1], [], []>} : vector<8x32xbf16>, vector<32x8xbf16>, vector<8x8xf32> -> vector<8x8xf32>
    %c0_39 = arith.constant 0 : index
    %c0_40 = arith.constant 0 : index
    %c0_41 = arith.constant 0 : index
    %71 = vector.load %arg12[%c0_39, %c0_40, %c0_41] : memref<4x1x8xf32, #tpu.memory_space<vmem>>, vector<1x1x8xf32>
    %72 = vector.shape_cast %71 : vector<1x1x8xf32> to vector<1x8xf32>
    %73 = vector.broadcast %72 : vector<1x8xf32> to vector<8x8xf32>
    %74 = arith.addf %70, %73 : vector<8x8xf32>
    %cst_42 = arith.constant 0.353553385 : f32
    %75 = vector.broadcast %cst_42 : f32 to vector<8x8xf32>
    %76 = arith.mulf %60, %75 : vector<8x8xf32>
    %77 = arith.truncf %76 : vector<8x8xf32> to vector<8x8xbf16>
    %78 = arith.truncf %67 : vector<8x8xf32> to vector<8x8xbf16>
    %79 = arith.truncf %74 : vector<8x8xf32> to vector<8x8xbf16>
    %cst_43 = arith.constant dense<0.000000e+00> : vector<8x8xf32>
    %80 = tpu.matmul %77, %78, %cst_43 {dimension_numbers = #tpu.dot_dimension_numbers<[1], [1], [0], [0], [0, 0, 1, 0], [], []>} : vector<8x8xbf16>, vector<8x8xbf16>, vector<8x8xf32> -> vector<8x8xf32>
    %81 = arith.addf %80, %4 : vector<8x8xf32>
    %cst_44 = arith.constant dense<0xFF800000> : vector<8xf32>
    %82 = vector.multi_reduction <maximumf>, %81, %cst_44 [1] : vector<8x8xf32> to vector<8xf32>
    %83 = vector.shape_cast %82 : vector<8xf32> to vector<8x1xf32>
    %84 = vector.broadcast %83 : vector<8x1xf32> to vector<8x8xf32>
    %85 = arith.subf %81, %84 : vector<8x8xf32>
    %86 = math.exp %85 : vector<8x8xf32>
    %cst_45 = arith.constant dense<0.000000e+00> : vector<8xf32>
    %87 = vector.multi_reduction <add>, %86, %cst_45 [1] : vector<8x8xf32> to vector<8xf32>
    %88 = vector.shape_cast %87 : vector<8xf32> to vector<8x1xf32>
    %89 = tpu.reciprocal %88 {approx = true} : vector<8x1xf32> -> vector<8x1xf32>
    %90 = vector.broadcast %89 : vector<8x1xf32> to vector<8x8xf32>
    %91 = arith.mulf %86, %90 : vector<8x8xf32>
    %92 = arith.truncf %91 : vector<8x8xf32> to vector<8x8xbf16>
    %cst_46 = arith.constant dense<0.000000e+00> : vector<8x8xf32>
    %93 = tpu.matmul %92, %79, %cst_46 {dimension_numbers = #tpu.dot_dimension_numbers<[1], [0], [0], [1], [0, 0, 1, 1], [], []>} : vector<8x8xbf16>, vector<8x8xbf16>, vector<8x8xf32> -> vector<8x8xf32>
    %94 = arith.truncf %93 : vector<8x8xf32> to vector<8x8xbf16>
    %c0_47 = arith.constant 0 : index
    %c0_48 = arith.constant 0 : index
    %c0_49 = arith.constant 0 : index
    %95 = vector.load %arg13[%c0_47, %c0_48, %c0_49] : memref<4x8x32xbf16, #tpu.memory_space<vmem>>, vector<1x8x32xbf16>
    %96 = vector.shape_cast %95 : vector<1x8x32xbf16> to vector<8x32xbf16>
    %cst_50 = arith.constant dense<0.000000e+00> : vector<8x32xf32>
    %97 = tpu.matmul %94, %96, %cst_50 {dimension_numbers = #tpu.dot_dimension_numbers<[1], [0], [0], [1], [0, 0, 1, 1], [], []>} : vector<8x8xbf16>, vector<8x32xbf16>, vector<8x32xf32> -> vector<8x32xf32>
    %98 = arith.addf %53, %97 : vector<8x32xf32>
    %c1 = arith.constant 1 : index
    %c0_51 = arith.constant 0 : index
    %c0_52 = arith.constant 0 : index
    %99 = vector.load %arg7[%c1, %c0_51, %c0_52] : memref<4x32x8xbf16, #tpu.memory_space<vmem>>, vector<1x32x8xbf16>
    %100 = vector.shape_cast %99 : vector<1x32x8xbf16> to vector<32x8xbf16>
    %cst_53 = arith.constant dense<0.000000e+00> : vector<8x8xf32>
    %101 = tpu.matmul %52, %100, %cst_53 {dimension_numbers = #tpu.dot_dimension_numbers<[1], [0], [0], [1], [0, 0, 1, 1], [], []>} : vector<8x32xbf16>, vector<32x8xbf16>, vector<8x8xf32> -> vector<8x8xf32>
    %c1_54 = arith.constant 1 : index
    %c0_55 = arith.constant 0 : index
    %c0_56 = arith.constant 0 : index
    %102 = vector.load %arg8[%c1_54, %c0_55, %c0_56] : memref<4x1x8xf32, #tpu.memory_space<vmem>>, vector<1x1x8xf32>
    %103 = vector.shape_cast %102 : vector<1x1x8xf32> to vector<1x8xf32>
    %104 = vector.broadcast %103 : vector<1x8xf32> to vector<8x8xf32>
    %105 = arith.addf %101, %104 : vector<8x8xf32>
    %c1_57 = arith.constant 1 : index
    %c0_58 = arith.constant 0 : index
    %c0_59 = arith.constant 0 : index
    %106 = vector.load %arg9[%c1_57, %c0_58, %c0_59] : memref<4x32x8xbf16, #tpu.memory_space<vmem>>, vector<1x32x8xbf16>
    %107 = vector.shape_cast %106 : vector<1x32x8xbf16> to vector<32x8xbf16>
    %cst_60 = arith.constant dense<0.000000e+00> : vector<8x8xf32>
    %108 = tpu.matmul %29, %107, %cst_60 {dimension_numbers = #tpu.dot_dimension_numbers<[1], [0], [0], [1], [0, 0, 1, 1], [], []>} : vector<8x32xbf16>, vector<32x8xbf16>, vector<8x8xf32> -> vector<8x8xf32>
    %c1_61 = arith.constant 1 : index
    %c0_62 = arith.constant 0 : index
    %c0_63 = arith.constant 0 : index
    %109 = vector.load %arg10[%c1_61, %c0_62, %c0_63] : memref<4x1x8xf32, #tpu.memory_space<vmem>>, vector<1x1x8xf32>
    %110 = vector.shape_cast %109 : vector<1x1x8xf32> to vector<1x8xf32>
    %111 = vector.broadcast %110 : vector<1x8xf32> to vector<8x8xf32>
    %112 = arith.addf %108, %111 : vector<8x8xf32>
    %c1_64 = arith.constant 1 : index
    %c0_65 = arith.constant 0 : index
    %c0_66 = arith.constant 0 : index
    %113 = vector.load %arg11[%c1_64, %c0_65, %c0_66] : memref<4x32x8xbf16, #tpu.memory_space<vmem>>, vector<1x32x8xbf16>
    %114 = vector.shape_cast %113 : vector<1x32x8xbf16> to vector<32x8xbf16>
    %cst_67 = arith.constant dense<0.000000e+00> : vector<8x8xf32>
    %115 = tpu.matmul %29, %114, %cst_67 {dimension_numbers = #tpu.dot_dimension_numbers<[1], [0], [0], [1], [0, 0, 1, 1], [], []>} : vector<8x32xbf16>, vector<32x8xbf16>, vector<8x8xf32> -> vector<8x8xf32>
    %c1_68 = arith.constant 1 : index
    %c0_69 = arith.constant 0 : index
    %c0_70 = arith.constant 0 : index
    %116 = vector.load %arg12[%c1_68, %c0_69, %c0_70] : memref<4x1x8xf32, #tpu.memory_space<vmem>>, vector<1x1x8xf32>
    %117 = vector.shape_cast %116 : vector<1x1x8xf32> to vector<1x8xf32>
    %118 = vector.broadcast %117 : vector<1x8xf32> to vector<8x8xf32>
    %119 = arith.addf %115, %118 : vector<8x8xf32>
    %cst_71 = arith.constant 0.353553385 : f32
    %120 = vector.broadcast %cst_71 : f32 to vector<8x8xf32>
    %121 = arith.mulf %105, %120 : vector<8x8xf32>
    %122 = arith.truncf %121 : vector<8x8xf32> to vector<8x8xbf16>
    %123 = arith.truncf %112 : vector<8x8xf32> to vector<8x8xbf16>
    %124 = arith.truncf %119 : vector<8x8xf32> to vector<8x8xbf16>
    %cst_72 = arith.constant dense<0.000000e+00> : vector<8x8xf32>
    %125 = tpu.matmul %122, %123, %cst_72 {dimension_numbers = #tpu.dot_dimension_numbers<[1], [1], [0], [0], [0, 0, 1, 0], [], []>} : vector<8x8xbf16>, vector<8x8xbf16>, vector<8x8xf32> -> vector<8x8xf32>
    %126 = arith.addf %125, %4 : vector<8x8xf32>
    %cst_73 = arith.constant dense<0xFF800000> : vector<8xf32>
    %127 = vector.multi_reduction <maximumf>, %126, %cst_73 [1] : vector<8x8xf32> to vector<8xf32>
    %128 = vector.shape_cast %127 : vector<8xf32> to vector<8x1xf32>
    %129 = vector.broadcast %128 : vector<8x1xf32> to vector<8x8xf32>
    %130 = arith.subf %126, %129 : vector<8x8xf32>
    %131 = math.exp %130 : vector<8x8xf32>
    %cst_74 = arith.constant dense<0.000000e+00> : vector<8xf32>
    %132 = vector.multi_reduction <add>, %131, %cst_74 [1] : vector<8x8xf32> to vector<8xf32>
    %133 = vector.shape_cast %132 : vector<8xf32> to vector<8x1xf32>
    %134 = tpu.reciprocal %133 {approx = true} : vector<8x1xf32> -> vector<8x1xf32>
    %135 = vector.broadcast %134 : vector<8x1xf32> to vector<8x8xf32>
    %136 = arith.mulf %131, %135 : vector<8x8xf32>
    %137 = arith.truncf %136 : vector<8x8xf32> to vector<8x8xbf16>
    %cst_75 = arith.constant dense<0.000000e+00> : vector<8x8xf32>
    %138 = tpu.matmul %137, %124, %cst_75 {dimension_numbers = #tpu.dot_dimension_numbers<[1], [0], [0], [1], [0, 0, 1, 1], [], []>} : vector<8x8xbf16>, vector<8x8xbf16>, vector<8x8xf32> -> vector<8x8xf32>
    %139 = arith.truncf %138 : vector<8x8xf32> to vector<8x8xbf16>
    %c1_76 = arith.constant 1 : index
    %c0_77 = arith.constant 0 : index
    %c0_78 = arith.constant 0 : index
    %140 = vector.load %arg13[%c1_76, %c0_77, %c0_78] : memref<4x8x32xbf16, #tpu.memory_space<vmem>>, vector<1x8x32xbf16>
    %141 = vector.shape_cast %140 : vector<1x8x32xbf16> to vector<8x32xbf16>
    %cst_79 = arith.constant dense<0.000000e+00> : vector<8x32xf32>
    %142 = tpu.matmul %139, %141, %cst_79 {dimension_numbers = #tpu.dot_dimension_numbers<[1], [0], [0], [1], [0, 0, 1, 1], [], []>} : vector<8x8xbf16>, vector<8x32xbf16>, vector<8x32xf32> -> vector<8x32xf32>
    %143 = arith.addf %98, %142 : vector<8x32xf32>
    %c2 = arith.constant 2 : index
    %c0_80 = arith.constant 0 : index
    %c0_81 = arith.constant 0 : index
    %144 = vector.load %arg7[%c2, %c0_80, %c0_81] : memref<4x32x8xbf16, #tpu.memory_space<vmem>>, vector<1x32x8xbf16>
    %145 = vector.shape_cast %144 : vector<1x32x8xbf16> to vector<32x8xbf16>
    %cst_82 = arith.constant dense<0.000000e+00> : vector<8x8xf32>
    %146 = tpu.matmul %52, %145, %cst_82 {dimension_numbers = #tpu.dot_dimension_numbers<[1], [0], [0], [1], [0, 0, 1, 1], [], []>} : vector<8x32xbf16>, vector<32x8xbf16>, vector<8x8xf32> -> vector<8x8xf32>
    %c2_83 = arith.constant 2 : index
    %c0_84 = arith.constant 0 : index
    %c0_85 = arith.constant 0 : index
    %147 = vector.load %arg8[%c2_83, %c0_84, %c0_85] : memref<4x1x8xf32, #tpu.memory_space<vmem>>, vector<1x1x8xf32>
    %148 = vector.shape_cast %147 : vector<1x1x8xf32> to vector<1x8xf32>
    %149 = vector.broadcast %148 : vector<1x8xf32> to vector<8x8xf32>
    %150 = arith.addf %146, %149 : vector<8x8xf32>
    %c2_86 = arith.constant 2 : index
    %c0_87 = arith.constant 0 : index
    %c0_88 = arith.constant 0 : index
    %151 = vector.load %arg9[%c2_86, %c0_87, %c0_88] : memref<4x32x8xbf16, #tpu.memory_space<vmem>>, vector<1x32x8xbf16>
    %152 = vector.shape_cast %151 : vector<1x32x8xbf16> to vector<32x8xbf16>
    %cst_89 = arith.constant dense<0.000000e+00> : vector<8x8xf32>
    %153 = tpu.matmul %29, %152, %cst_89 {dimension_numbers = #tpu.dot_dimension_numbers<[1], [0], [0], [1], [0, 0, 1, 1], [], []>} : vector<8x32xbf16>, vector<32x8xbf16>, vector<8x8xf32> -> vector<8x8xf32>
    %c2_90 = arith.constant 2 : index
    %c0_91 = arith.constant 0 : index
    %c0_92 = arith.constant 0 : index
    %154 = vector.load %arg10[%c2_90, %c0_91, %c0_92] : memref<4x1x8xf32, #tpu.memory_space<vmem>>, vector<1x1x8xf32>
    %155 = vector.shape_cast %154 : vector<1x1x8xf32> to vector<1x8xf32>
    %156 = vector.broadcast %155 : vector<1x8xf32> to vector<8x8xf32>
    %157 = arith.addf %153, %156 : vector<8x8xf32>
    %c2_93 = arith.constant 2 : index
    %c0_94 = arith.constant 0 : index
    %c0_95 = arith.constant 0 : index
    %158 = vector.load %arg11[%c2_93, %c0_94, %c0_95] : memref<4x32x8xbf16, #tpu.memory_space<vmem>>, vector<1x32x8xbf16>
    %159 = vector.shape_cast %158 : vector<1x32x8xbf16> to vector<32x8xbf16>
    %cst_96 = arith.constant dense<0.000000e+00> : vector<8x8xf32>
    %160 = tpu.matmul %29, %159, %cst_96 {dimension_numbers = #tpu.dot_dimension_numbers<[1], [0], [0], [1], [0, 0, 1, 1], [], []>} : vector<8x32xbf16>, vector<32x8xbf16>, vector<8x8xf32> -> vector<8x8xf32>
    %c2_97 = arith.constant 2 : index
    %c0_98 = arith.constant 0 : index
    %c0_99 = arith.constant 0 : index
    %161 = vector.load %arg12[%c2_97, %c0_98, %c0_99] : memref<4x1x8xf32, #tpu.memory_space<vmem>>, vector<1x1x8xf32>
    %162 = vector.shape_cast %161 : vector<1x1x8xf32> to vector<1x8xf32>
    %163 = vector.broadcast %162 : vector<1x8xf32> to vector<8x8xf32>
    %164 = arith.addf %160, %163 : vector<8x8xf32>
    %cst_100 = arith.constant 0.353553385 : f32
    %165 = vector.broadcast %cst_100 : f32 to vector<8x8xf32>
    %166 = arith.mulf %150, %165 : vector<8x8xf32>
    %167 = arith.truncf %166 : vector<8x8xf32> to vector<8x8xbf16>
    %168 = arith.truncf %157 : vector<8x8xf32> to vector<8x8xbf16>
    %169 = arith.truncf %164 : vector<8x8xf32> to vector<8x8xbf16>
    %cst_101 = arith.constant dense<0.000000e+00> : vector<8x8xf32>
    %170 = tpu.matmul %167, %168, %cst_101 {dimension_numbers = #tpu.dot_dimension_numbers<[1], [1], [0], [0], [0, 0, 1, 0], [], []>} : vector<8x8xbf16>, vector<8x8xbf16>, vector<8x8xf32> -> vector<8x8xf32>
    %171 = arith.addf %170, %4 : vector<8x8xf32>
    %cst_102 = arith.constant dense<0xFF800000> : vector<8xf32>
    %172 = vector.multi_reduction <maximumf>, %171, %cst_102 [1] : vector<8x8xf32> to vector<8xf32>
    %173 = vector.shape_cast %172 : vector<8xf32> to vector<8x1xf32>
    %174 = vector.broadcast %173 : vector<8x1xf32> to vector<8x8xf32>
    %175 = arith.subf %171, %174 : vector<8x8xf32>
    %176 = math.exp %175 : vector<8x8xf32>
    %cst_103 = arith.constant dense<0.000000e+00> : vector<8xf32>
    %177 = vector.multi_reduction <add>, %176, %cst_103 [1] : vector<8x8xf32> to vector<8xf32>
    %178 = vector.shape_cast %177 : vector<8xf32> to vector<8x1xf32>
    %179 = tpu.reciprocal %178 {approx = true} : vector<8x1xf32> -> vector<8x1xf32>
    %180 = vector.broadcast %179 : vector<8x1xf32> to vector<8x8xf32>
    %181 = arith.mulf %176, %180 : vector<8x8xf32>
    %182 = arith.truncf %181 : vector<8x8xf32> to vector<8x8xbf16>
    %cst_104 = arith.constant dense<0.000000e+00> : vector<8x8xf32>
    %183 = tpu.matmul %182, %169, %cst_104 {dimension_numbers = #tpu.dot_dimension_numbers<[1], [0], [0], [1], [0, 0, 1, 1], [], []>} : vector<8x8xbf16>, vector<8x8xbf16>, vector<8x8xf32> -> vector<8x8xf32>
    %184 = arith.truncf %183 : vector<8x8xf32> to vector<8x8xbf16>
    %c2_105 = arith.constant 2 : index
    %c0_106 = arith.constant 0 : index
    %c0_107 = arith.constant 0 : index
    %185 = vector.load %arg13[%c2_105, %c0_106, %c0_107] : memref<4x8x32xbf16, #tpu.memory_space<vmem>>, vector<1x8x32xbf16>
    %186 = vector.shape_cast %185 : vector<1x8x32xbf16> to vector<8x32xbf16>
    %cst_108 = arith.constant dense<0.000000e+00> : vector<8x32xf32>
    %187 = tpu.matmul %184, %186, %cst_108 {dimension_numbers = #tpu.dot_dimension_numbers<[1], [0], [0], [1], [0, 0, 1, 1], [], []>} : vector<8x8xbf16>, vector<8x32xbf16>, vector<8x32xf32> -> vector<8x32xf32>
    %188 = arith.addf %143, %187 : vector<8x32xf32>
    %c3 = arith.constant 3 : index
    %c0_109 = arith.constant 0 : index
    %c0_110 = arith.constant 0 : index
    %189 = vector.load %arg7[%c3, %c0_109, %c0_110] : memref<4x32x8xbf16, #tpu.memory_space<vmem>>, vector<1x32x8xbf16>
    %190 = vector.shape_cast %189 : vector<1x32x8xbf16> to vector<32x8xbf16>
    %cst_111 = arith.constant dense<0.000000e+00> : vector<8x8xf32>
    %191 = tpu.matmul %52, %190, %cst_111 {dimension_numbers = #tpu.dot_dimension_numbers<[1], [0], [0], [1], [0, 0, 1, 1], [], []>} : vector<8x32xbf16>, vector<32x8xbf16>, vector<8x8xf32> -> vector<8x8xf32>
    %c3_112 = arith.constant 3 : index
    %c0_113 = arith.constant 0 : index
    %c0_114 = arith.constant 0 : index
    %192 = vector.load %arg8[%c3_112, %c0_113, %c0_114] : memref<4x1x8xf32, #tpu.memory_space<vmem>>, vector<1x1x8xf32>
    %193 = vector.shape_cast %192 : vector<1x1x8xf32> to vector<1x8xf32>
    %194 = vector.broadcast %193 : vector<1x8xf32> to vector<8x8xf32>
    %195 = arith.addf %191, %194 : vector<8x8xf32>
    %c3_115 = arith.constant 3 : index
    %c0_116 = arith.constant 0 : index
    %c0_117 = arith.constant 0 : index
    %196 = vector.load %arg9[%c3_115, %c0_116, %c0_117] : memref<4x32x8xbf16, #tpu.memory_space<vmem>>, vector<1x32x8xbf16>
    %197 = vector.shape_cast %196 : vector<1x32x8xbf16> to vector<32x8xbf16>
    %cst_118 = arith.constant dense<0.000000e+00> : vector<8x8xf32>
    %198 = tpu.matmul %29, %197, %cst_118 {dimension_numbers = #tpu.dot_dimension_numbers<[1], [0], [0], [1], [0, 0, 1, 1], [], []>} : vector<8x32xbf16>, vector<32x8xbf16>, vector<8x8xf32> -> vector<8x8xf32>
    %c3_119 = arith.constant 3 : index
    %c0_120 = arith.constant 0 : index
    %c0_121 = arith.constant 0 : index
    %199 = vector.load %arg10[%c3_119, %c0_120, %c0_121] : memref<4x1x8xf32, #tpu.memory_space<vmem>>, vector<1x1x8xf32>
    %200 = vector.shape_cast %199 : vector<1x1x8xf32> to vector<1x8xf32>
    %201 = vector.broadcast %200 : vector<1x8xf32> to vector<8x8xf32>
    %202 = arith.addf %198, %201 : vector<8x8xf32>
    %c3_122 = arith.constant 3 : index
    %c0_123 = arith.constant 0 : index
    %c0_124 = arith.constant 0 : index
    %203 = vector.load %arg11[%c3_122, %c0_123, %c0_124] : memref<4x32x8xbf16, #tpu.memory_space<vmem>>, vector<1x32x8xbf16>
    %204 = vector.shape_cast %203 : vector<1x32x8xbf16> to vector<32x8xbf16>
    %cst_125 = arith.constant dense<0.000000e+00> : vector<8x8xf32>
    %205 = tpu.matmul %29, %204, %cst_125 {dimension_numbers = #tpu.dot_dimension_numbers<[1], [0], [0], [1], [0, 0, 1, 1], [], []>} : vector<8x32xbf16>, vector<32x8xbf16>, vector<8x8xf32> -> vector<8x8xf32>
    %c3_126 = arith.constant 3 : index
    %c0_127 = arith.constant 0 : index
    %c0_128 = arith.constant 0 : index
    %206 = vector.load %arg12[%c3_126, %c0_127, %c0_128] : memref<4x1x8xf32, #tpu.memory_space<vmem>>, vector<1x1x8xf32>
    %207 = vector.shape_cast %206 : vector<1x1x8xf32> to vector<1x8xf32>
    %208 = vector.broadcast %207 : vector<1x8xf32> to vector<8x8xf32>
    %209 = arith.addf %205, %208 : vector<8x8xf32>
    %cst_129 = arith.constant 0.353553385 : f32
    %210 = vector.broadcast %cst_129 : f32 to vector<8x8xf32>
    %211 = arith.mulf %195, %210 : vector<8x8xf32>
    %212 = arith.truncf %211 : vector<8x8xf32> to vector<8x8xbf16>
    %213 = arith.truncf %202 : vector<8x8xf32> to vector<8x8xbf16>
    %214 = arith.truncf %209 : vector<8x8xf32> to vector<8x8xbf16>
    %cst_130 = arith.constant dense<0.000000e+00> : vector<8x8xf32>
    %215 = tpu.matmul %212, %213, %cst_130 {dimension_numbers = #tpu.dot_dimension_numbers<[1], [1], [0], [0], [0, 0, 1, 0], [], []>} : vector<8x8xbf16>, vector<8x8xbf16>, vector<8x8xf32> -> vector<8x8xf32>
    %216 = arith.addf %215, %4 : vector<8x8xf32>
    %cst_131 = arith.constant dense<0xFF800000> : vector<8xf32>
    %217 = vector.multi_reduction <maximumf>, %216, %cst_131 [1] : vector<8x8xf32> to vector<8xf32>
    %218 = vector.shape_cast %217 : vector<8xf32> to vector<8x1xf32>
    %219 = vector.broadcast %218 : vector<8x1xf32> to vector<8x8xf32>
    %220 = arith.subf %216, %219 : vector<8x8xf32>
    %221 = math.exp %220 : vector<8x8xf32>
    %cst_132 = arith.constant dense<0.000000e+00> : vector<8xf32>
    %222 = vector.multi_reduction <add>, %221, %cst_132 [1] : vector<8x8xf32> to vector<8xf32>
    %223 = vector.shape_cast %222 : vector<8xf32> to vector<8x1xf32>
    %224 = tpu.reciprocal %223 {approx = true} : vector<8x1xf32> -> vector<8x1xf32>
    %225 = vector.broadcast %224 : vector<8x1xf32> to vector<8x8xf32>
    %226 = arith.mulf %221, %225 : vector<8x8xf32>
    %227 = arith.truncf %226 : vector<8x8xf32> to vector<8x8xbf16>
    %cst_133 = arith.constant dense<0.000000e+00> : vector<8x8xf32>
    %228 = tpu.matmul %227, %214, %cst_133 {dimension_numbers = #tpu.dot_dimension_numbers<[1], [0], [0], [1], [0, 0, 1, 1], [], []>} : vector<8x8xbf16>, vector<8x8xbf16>, vector<8x8xf32> -> vector<8x8xf32>
    %229 = arith.truncf %228 : vector<8x8xf32> to vector<8x8xbf16>
    %c3_134 = arith.constant 3 : index
    %c0_135 = arith.constant 0 : index
    %c0_136 = arith.constant 0 : index
    %230 = vector.load %arg13[%c3_134, %c0_135, %c0_136] : memref<4x8x32xbf16, #tpu.memory_space<vmem>>, vector<1x8x32xbf16>
    %231 = vector.shape_cast %230 : vector<1x8x32xbf16> to vector<8x32xbf16>
    %cst_137 = arith.constant dense<0.000000e+00> : vector<8x32xf32>
    %232 = tpu.matmul %229, %231, %cst_137 {dimension_numbers = #tpu.dot_dimension_numbers<[1], [0], [0], [1], [0, 0, 1, 1], [], []>} : vector<8x8xbf16>, vector<8x32xbf16>, vector<8x32xf32> -> vector<8x32xf32>
    %233 = arith.addf %188, %232 : vector<8x32xf32>
    %c0_138 = arith.constant 0 : index
    %c0_139 = arith.constant 0 : index
    %234 = vector.load %arg14[%c0_138, %c0_139] : memref<1x32xf32, #tpu.memory_space<vmem>>, vector<1x32xf32>
    %235 = vector.broadcast %234 : vector<1x32xf32> to vector<8x32xf32>
    %236 = arith.addf %233, %235 : vector<8x32xf32>
    %237 = arith.addf %3, %236 : vector<8x32xf32>
    %c0_140 = arith.constant 0 : index
    %c0_141 = arith.constant 0 : index
    %238 = vector.load %arg15[%c0_140, %c0_141] : memref<1x32xf32, #tpu.memory_space<vmem>>, vector<1x32xf32>
    %c0_142 = arith.constant 0 : index
    %c0_143 = arith.constant 0 : index
    %239 = vector.load %arg16[%c0_142, %c0_143] : memref<1x32xf32, #tpu.memory_space<vmem>>, vector<1x32xf32>
    %cst_144 = arith.constant dense<0.000000e+00> : vector<8xf32>
    %240 = vector.multi_reduction <add>, %237, %cst_144 [1] : vector<8x32xf32> to vector<8xf32>
    %241 = vector.shape_cast %240 : vector<8xf32> to vector<8x1xf32>
    %cst_145 = arith.constant 3.200000e+01 : f32
    %242 = vector.broadcast %cst_145 : f32 to vector<8x1xf32>
    %243 = arith.divf %241, %242 : vector<8x1xf32>
    %244 = vector.broadcast %243 : vector<8x1xf32> to vector<8x32xf32>
    %245 = arith.subf %237, %244 : vector<8x32xf32>
    %246 = arith.mulf %245, %245 : vector<8x32xf32>
    %cst_146 = arith.constant dense<0.000000e+00> : vector<8xf32>
    %247 = vector.multi_reduction <add>, %246, %cst_146 [1] : vector<8x32xf32> to vector<8xf32>
    %248 = vector.shape_cast %247 : vector<8xf32> to vector<8x1xf32>
    %cst_147 = arith.constant 3.200000e+01 : f32
    %249 = vector.broadcast %cst_147 : f32 to vector<8x1xf32>
    %250 = arith.divf %248, %249 : vector<8x1xf32>
    %251 = vector.broadcast %243 : vector<8x1xf32> to vector<8x32xf32>
    %252 = arith.subf %237, %251 : vector<8x32xf32>
    %cst_148 = arith.constant 9.99999974E-6 : f32
    %253 = vector.broadcast %cst_148 : f32 to vector<8x1xf32>
    %254 = arith.addf %250, %253 : vector<8x1xf32>
    %255 = math.rsqrt %254 : vector<8x1xf32>
    %256 = vector.broadcast %255 : vector<8x1xf32> to vector<8x32xf32>
    %257 = arith.mulf %252, %256 : vector<8x32xf32>
    %258 = vector.broadcast %238 : vector<1x32xf32> to vector<8x32xf32>
    %259 = arith.mulf %257, %258 : vector<8x32xf32>
    %260 = vector.broadcast %239 : vector<1x32xf32> to vector<8x32xf32>
    %261 = arith.addf %259, %260 : vector<8x32xf32>
    %262 = arith.truncf %261 : vector<8x32xf32> to vector<8x32xbf16>
    %c0_149 = arith.constant 0 : index
    %c0_150 = arith.constant 0 : index
    %263 = vector.load %arg17[%c0_149, %c0_150] : memref<32x128xbf16, #tpu.memory_space<vmem>>, vector<32x128xbf16>
    %cst_151 = arith.constant dense<0.000000e+00> : vector<8x128xf32>
    %264 = tpu.matmul %262, %263, %cst_151 {dimension_numbers = #tpu.dot_dimension_numbers<[1], [0], [0], [1], [0, 0, 1, 1], [], []>} : vector<8x32xbf16>, vector<32x128xbf16>, vector<8x128xf32> -> vector<8x128xf32>
    %c0_152 = arith.constant 0 : index
    %c0_153 = arith.constant 0 : index
    %265 = vector.load %arg18[%c0_152, %c0_153] : memref<1x128xf32, #tpu.memory_space<vmem>>, vector<1x128xf32>
    %266 = vector.broadcast %265 : vector<1x128xf32> to vector<8x128xf32>
    %267 = arith.addf %264, %266 : vector<8x128xf32>
    %cst_154 = arith.constant 5.000000e-01 : f32
    %268 = vector.broadcast %cst_154 : f32 to vector<8x128xf32>
    %269 = arith.mulf %268, %267 : vector<8x128xf32>
    %cst_155 = arith.constant 0.707106769 : f32
    %270 = vector.broadcast %cst_155 : f32 to vector<8x128xf32>
    %271 = arith.mulf %267, %270 : vector<8x128xf32>
    %272 = math.erf %271 : vector<8x128xf32>
    %cst_156 = arith.constant 1.000000e+00 : f32
    %273 = vector.broadcast %cst_156 : f32 to vector<8x128xf32>
    %274 = arith.addf %273, %272 : vector<8x128xf32>
    %275 = arith.mulf %269, %274 : vector<8x128xf32>
    %276 = arith.truncf %275 : vector<8x128xf32> to vector<8x128xbf16>
    %c0_157 = arith.constant 0 : index
    %c0_158 = arith.constant 0 : index
    %277 = vector.load %arg19[%c0_157, %c0_158] : memref<128x32xbf16, #tpu.memory_space<vmem>>, vector<128x32xbf16>
    %cst_159 = arith.constant dense<0.000000e+00> : vector<8x32xf32>
    %278 = tpu.matmul %276, %277, %cst_159 {dimension_numbers = #tpu.dot_dimension_numbers<[1], [0], [0], [1], [0, 0, 1, 1], [], []>} : vector<8x128xbf16>, vector<128x32xbf16>, vector<8x32xf32> -> vector<8x32xf32>
    %c0_160 = arith.constant 0 : index
    %c0_161 = arith.constant 0 : index
    %279 = vector.load %arg20[%c0_160, %c0_161] : memref<1x32xf32, #tpu.memory_space<vmem>>, vector<1x32xf32>
    %280 = vector.broadcast %279 : vector<1x32xf32> to vector<8x32xf32>
    %281 = arith.addf %278, %280 : vector<8x32xf32>
    %282 = arith.addf %237, %281 : vector<8x32xf32>
    %c0_162 = arith.constant 0 : index
    %c0_163 = arith.constant 0 : index
    %c0_164 = arith.constant 0 : index
    %283 = vector.load %arg21[%c0_162, %c0_163, %c0_164] : memref<1x8x32xf32, #tpu.memory_space<vmem>>, vector<1x8x32xf32>
    %284 = vector.shape_cast %283 : vector<1x8x32xf32> to vector<8x32xf32>
    %285 = vector.shape_cast %282 : vector<8x32xf32> to vector<1x8x32xf32>
    tpu.vector_store %arg21[%c0_162, %c0_163, %c0_164], %285 {strides = array<i32>} : memref<1x8x32xf32, #tpu.memory_space<vmem>>, vector<1x8x32xf32>,
    return
  }
  func.func @transform_0(%arg0: i32, %arg1: i32) -> (i32, i32, i32) {
    %c0_i32 = arith.constant 0 : i32
    %c0_i32_0 = arith.constant 0 : i32
    %c0_i32_1 = arith.constant 0 : i32
    return %arg0, %c0_i32, %c0_i32_0 : i32, i32, i32
  }
  func.func @transform_1(%arg0: i32, %arg1: i32) -> (i32, i32, i32) {
    %c0_i32 = arith.constant 0 : i32
    %c0_i32_0 = arith.constant 0 : i32
    return %arg0, %arg1, %c0_i32 : i32, i32, i32
  }
  func.func @transform_2(%arg0: i32, %arg1: i32) -> (i32, i32) {
    %c0_i32 = arith.constant 0 : i32
    %c0_i32_0 = arith.constant 0 : i32
    return %arg1, %c0_i32 : i32, i32
  }
  func.func @transform_3(%arg0: i32, %arg1: i32) -> (i32, i32) {
    %c0_i32 = arith.constant 0 : i32
    %c0_i32_0 = arith.constant 0 : i32
    %c0_i32_1 = arith.constant 0 : i32
    return %c0_i32, %c0_i32_0 : i32, i32
  }
  func.func @transform_4(%arg0: i32, %arg1: i32) -> (i32, i32) {
    %c0_i32 = arith.constant 0 : i32
    %c0_i32_0 = arith.constant 0 : i32
    %c0_i32_1 = arith.constant 0 : i32
    return %c0_i32, %c0_i32_0 : i32, i32
  }
  func.func @transform_5(%arg0: i32, %arg1: i32) -> (i32, i32, i32) {
    %c0_i32 = arith.constant 0 : i32
    %c0_i32_0 = arith.constant 0 : i32
    %c0_i32_1 = arith.constant 0 : i32
    %c0_i32_2 = arith.constant 0 : i32
    return %c0_i32, %c0_i32_0, %c0_i32_1 : i32, i32, i32
  }
  func.func @transform_6(%arg0: i32, %arg1: i32) -> (i32, i32, i32) {
    %c0_i32 = arith.constant 0 : i32
    %c0_i32_0 = arith.constant 0 : i32
    %c0_i32_1 = arith.constant 0 : i32
    %c0_i32_2 = arith.constant 0 : i32
    return %c0_i32, %c0_i32_0, %c0_i32_1 : i32, i32, i32
  }
  func.func @transform_7(%arg0: i32, %arg1: i32) -> (i32, i32, i32) {
    %c0_i32 = arith.constant 0 : i32
    %c0_i32_0 = arith.constant 0 : i32
    %c0_i32_1 = arith.constant 0 : i32
    %c0_i32_2 = arith.constant 0 : i32
    return %c0_i32, %c0_i32_0, %c0_i32_1 : i32, i32, i32
  }
  func.func @transform_8(%arg0: i32, %arg1: i32) -> (i32, i32, i32) {
    %c0_i32 = arith.constant 0 : i32
    %c0_i32_0 = arith.constant 0 : i32
    %c0_i32_1 = arith.constant 0 : i32
    %c0_i32_2 = arith.constant 0 : i32
    return %c0_i32, %c0_i32_0, %c0_i32_1 : i32, i32, i32
  }
  func.func @transform_9(%arg0: i32, %arg1: i32) -> (i32, i32, i32) {
    %c0_i32 = arith.constant 0 : i32
    %c0_i32_0 = arith.constant 0 : i32
    %c0_i32_1 = arith.constant 0 : i32
    %c0_i32_2 = arith.constant 0 : i32
    return %c0_i32, %c0_i32_0, %c0_i32_1 : i32, i32, i32
  }
  func.func @transform_10(%arg0: i32, %arg1: i32) -> (i32, i32, i32) {
    %c0_i32 = arith.constant 0 : i32
    %c0_i32_0 = arith.constant 0 : i32
    %c0_i32_1 = arith.constant 0 : i32
    %c0_i32_2 = arith.constant 0 : i32
    return %c0_i32, %c0_i32_0, %c0_i32_1 : i32, i32, i32
  }
  func.func @transform_11(%arg0: i32, %arg1: i32) -> (i32, i32, i32) {
    %c0_i32 = arith.constant 0 : i32
    %c0_i32_0 = arith.constant 0 : i32
    %c0_i32_1 = arith.constant 0 : i32
    %c0_i32_2 = arith.constant 0 : i32
    return %c0_i32, %c0_i32_0, %c0_i32_1 : i32, i32, i32
  }
  func.func @transform_12(%arg0: i32, %arg1: i32) -> (i32, i32) {
    %c0_i32 = arith.constant 0 : i32
    %c0_i32_0 = arith.constant 0 : i32
    %c0_i32_1 = arith.constant 0 : i32
    return %c0_i32, %c0_i32_0 : i32, i32
  }
  func.func @transform_13(%arg0: i32, %arg1: i32) -> (i32, i32) {
    %c0_i32 = arith.constant 0 : i32
    %c0_i32_0 = arith.constant 0 : i32
    %c0_i32_1 = arith.constant 0 : i32
    return %c0_i32, %c0_i32_0 : i32, i32
  }
  func.func @transform_14(%arg0: i32, %arg1: i32) -> (i32, i32) {
    %c0_i32 = arith.constant 0 : i32
    %c0_i32_0 = arith.constant 0 : i32
    %c0_i32_1 = arith.constant 0 : i32
    return %c0_i32, %c0_i32_0 : i32, i32
  }
  func.func @transform_15(%arg0: i32, %arg1: i32) -> (i32, i32) {
    %c0_i32 = arith.constant 0 : i32
    %c0_i32_0 = arith.constant 0 : i32
    %c0_i32_1 = arith.constant 0 : i32
    return %c0_i32, %c0_i32_0 : i32, i32
  }
  func.func @transform_16(%arg0: i32, %arg1: i32) -> (i32, i32) {
    %c0_i32 = arith.constant 0 : i32
    %c0_i32_0 = arith.constant 0 : i32
    %c0_i32_1 = arith.constant 0 : i32
    return %c0_i32, %c0_i32_0 : i32, i32
  }
  func.func @transform_17(%arg0: i32, %arg1: i32) -> (i32, i32) {
    %c0_i32 = arith.constant 0 : i32
    %c0_i32_0 = arith.constant 0 : i32
    %c0_i32_1 = arith.constant 0 : i32
    return %c0_i32, %c0_i32_0 : i32, i32
  }
  func.func @transform_18(%arg0: i32, %arg1: i32) -> (i32, i32) {
    %c0_i32 = arith.constant 0 : i32
    %c0_i32_0 = arith.constant 0 : i32
    %c0_i32_1 = arith.constant 0 : i32
    return %c0_i32, %c0_i32_0 : i32, i32
  }
  func.func @transform_19(%arg0: i32, %arg1: i32) -> (i32, i32, i32) {
    %c0_i32 = arith.constant 0 : i32
    %c0_i32_0 = arith.constant 0 : i32
    return %arg0, %arg1, %c0_i32 : i32, i32, i32
  }
}

</mosaic_0001>

<bundles_post_ra>
// kernel: tpu_custom_call.1
= control target key start
LH: loop header
LB: loop body
LE: loop exit
PB: predicated region body
PF: predicated region fallthrough
CT: control target
= control target key end

     0   :  { %s3636_s0 = inlined_call_operand.vmem [shape: f32[2,8,32], index: 0, kind: input, shape index: {}]   ;;  %s3637_s1 = inlined_call_operand.vmem [shape: f32[2,8,32], index: 1, kind: input, shape index: {}]   ;;  %s3638_s2 = inlined_call_operand.vmem [shape: f32[8,8], index: 2, kind: input, shape index: {}]   ;;  %s3639_s3 = inlined_call_operand.vmem [shape: f32[1,32], index: 3, kind: input, shape index: {}]   ;;  %s3640_s4 = inlined_call_operand.vmem [shape: f32[1,32], index: 4, kind: input, shape index: {}]   ;;  %s3641_s5 = inlined_call_operand.vmem [shape: bf16[4,32,8], index: 5, kind: input, shape index: {}]   ;;  %s3642_s6 = inlined_call_operand.vmem [shape: f32[4,1,8], index: 6, kind: input, shape index: {}]   ;;  %s3643_s7 = inlined_call_operand.vmem [shape: bf16[4,32,8], index: 7, kind: input, shape index: {}]   ;;  %s3644_s8 = inlined_call_operand.vmem [shape: f32[4,1,8], index: 8, kind: input, shape index: {}]   ;;  %s3645_s9 = inlined_call_operand.vmem [shape: bf16[4,32,8], index: 9, kind: input, shape index: {}]   ;;  %s3646_s10 = inlined_call_operand.vmem [shape: f32[4,1,8], index: 10, kind: input, shape index: {}]   ;;  %s3647_s11 = inlined_call_operand.vmem [shape: bf16[4,8,32], index: 11, kind: input, shape index: {}]   ;;  %s3648_s12 = inlined_call_operand.vmem [shape: f32[1,32], index: 12, kind: input, shape index: {}]   ;;  %s3649_s13 = inlined_call_operand.vmem [shape: f32[1,32], index: 13, kind: input, shape index: {}]   ;;  %s3650_s14 = inlined_call_operand.vmem [shape: f32[1,32], index: 14, kind: input, shape index: {}]   ;;  %s3651_s15 = inlined_call_operand.vmem [shape: bf16[32,128], index: 15, kind: input, shape index: {}]   ;;  %s3652_s16 = inlined_call_operand.vmem [shape: f32[1,128], index: 16, kind: input, shape index: {}]   ;;  %s3653_s17 = inlined_call_operand.vmem [shape: bf16[128,32], index: 17, kind: input, shape index: {}]   ;;  %s3654_s18 = inlined_call_operand.vmem [shape: f32[1,32], index: 18, kind: input, shape index: {}]   ;;  %s3655_s19 = inlined_call_operand.hbm [shape: f32[2,8,32], index: 19, kind: output, shape index: {}]  }
   0x1   :  { %3662 = sst [smem:[#allocation9_spill]] %s3636_s0 }
   0x2   :  { %3663 = sst [smem:[#allocation10_spill]] %s3637_s1 }
   0x3   :  { %3664 = sst [smem:[#allocation11_spill]] %s3638_s2 }
   0x4   :  { %3665 = sst [smem:[#allocation12_spill]] %s3639_s3 }
   0x5   :  { %3666 = sst [smem:[#allocation13_spill]] %s3640_s4 }
   0x6   :  { %3667 = sst [smem:[#allocation14_spill]] %s3641_s5 }
   0x7   :  { %3668 = sst [smem:[#allocation15_spill]] %s3654_s18 }
   0x8   :  { %3669 = sst [smem:[#allocation16_spill]] %s3655_s19 }
   0x9   :  { %24 = vsyncpa [#allocation3], 0 }
   0xa   :  { %26 = vsyncpa [#allocation3 + $0x1], 0  ;;  %s3162_s0 = smov 0   ;;  %s3164_s30 = smov 0  }
   0xb   :  { %s3166_s20 = smov 0   ;;  %s3168_s21 = smov 0  }
   0xc   :  { %s3170_s1 = smov 0   ;;  %s3172_s22 = smov 0  }
   0xd LB: > { %3670 = sst [smem:[#allocation5_spill]] %s3037_s0  ;;  %s2457_s2 = sadd.s32 4294967295, %s3057_s22   ;;  %s3057_s22 = sphi %s3172_s22, %s32_s22   ;;  %s3053_s1 = sphi %s3170_s1, %s3687_s1   ;;  %s3049_s21 = sphi %s3168_s21, %s3686_s21   ;;  %s3045_s20 = sphi %s3166_s20, %s3690_s20   ;;  %s3041_s30 = sphi %s3164_s30, %s3689_s30   ;;  %s3037_s0 = sphi %s3162_s0, %s3688_s0  }
   0xe   : > { %3671 = sst [smem:[#allocation6_spill]] %s3053_s1  ;;  %s2458_s23 = sadd.s32 4294967294, %s3057_s22  }
   0xf   : > { %s44_s24 = sadd.s32 1, %s3053_s1  ;;  %s469_s25 = sadd.s32 1, %s3045_s20 }
  0x10   : > { %p46_p0 = scmp.ge.s32.totalorder %s44_s24, 2  ;;  %p479_p1 = scmp.ne.s32.totalorder %s3045_s20, %s3041_s30 }
  0x11   : > { %p480_p2 = scmp.eq.s32.totalorder %s2457_s2, 1  ;;  %p485_p3 = scmp.ne.s32.totalorder %s3041_s30, %s3037_s0 }
  0x12   : > { %s3692_s24 = smov (%p46_p0, %s44_s24), 0  ;;  %p486_p5 = scmp.eq.s32.totalorder %s2458_s23, 1 }
  0x13   : > { %3672 = sst [smem:[#allocation7_spill]] %s3692_s24  ;;  %p3202_p4 = por %p480_p2, %p479_p1 }
  0x14   : > { %s464_s26 = ssub.s32 %s3053_s1, %s3692_s24  ;;  %p2462_p6 = scmp.ge.s32.totalorder %s3057_s22, 1 }
  0x15   : > { %s3673_s3 = scalar_select %p3202_p4, 1, 0 }
  0x16   : > { %p467_p7 = scmp.eq.s32.totalorder %s464_s26, 0  ;;  %p3209_p8 = por %p486_p5, %p485_p3 }
  0x17   : > { %3674 = sst [smem:[#allocation8_spill]] %s3673_s3  ;;  %p576_p9 = scmp.lt.s32.totalorder %s3057_s22, 3 }
  0x18   : > { %s3215_s28 = scalar_select %p467_p7, %s3045_s20, %s469_s25  }
  0x19   : > { %p577_p10 = pnand %p2462_p6, %p576_p9 }
  0x1a   : > { %p642_p11 = scmp.lt.s32.totalorder (!%p577_p10), %s3049_s21, 1  ;;  %vm663_vm0 = vcmask (!%p577_p10), 261120   ;;  %s3676_s24 = sld [smem:[#allocation10_spill]] (!%p577_p10)  ;;  %v3059_v15 = vmov (!%p577_p10), 0.0   ;;  %vm3060_vm1 = vmmov (!%p577_p10), 0   ;;  %v2923_v31 = vld [vmem:[%s3643_s7] sm:$0xff] (!%p577_p10)  }
  0x1b   : > { %580 = sbr.rel (%p577_p10) target bundleno = 5034 (0x13aa), region = 96  ;;  %s3677_s3 = sld [smem:[#allocation9_spill]] (!%p577_p10)  ;;  %2668 = vmatprep.subr.bf16.mxu0 (!%p577_p10), %v3059_v15  ;;  %2692 = vmatprep.subr.bf16.mxu1 (!%p577_p10), %v3059_v15  ;;  %v2924_v34 = vld [vmem:[%s3643_s7 + $0x8] sm:$0xff] (!%p577_p10)   ;;  %v2925_v36 = vld [vmem:[%s3645_s9] sm:$0xff] (!%p577_p10)   ;;  %vm908_vm2 = vcmask (!%p577_p10), 64512   ;;  %vm970_vm3 = vcmask (!%p577_p10), 1043456  }
  0x1c   : > { %s3678_s5 = sld [smem:[#allocation14_spill]] (!%p577_p10)  ;;  %2672 = vmatprep.mubr.msk.bf16.mxu0 (!%p577_p10), %vm3060_vm1, %v3059_v15  ;;  %2694 = vmatprep.mubr.msk.bf16.mxu1 (!%p577_p10), %vm3060_vm1, %v3059_v15  ;;  %s3680_s4 = sld [smem:[#allocation13_spill]] (!%p577_p10)  ;;  %v2926_v38 = vld [vmem:[%s3645_s9 + $0x8] sm:$0xff] (!%p577_p10)   ;;  %v2472_v43 = vld [vmem:[%s3644_s8] ss:$0 sm:$0xff] (!%p577_p10) }
  0x1d   : > { %v2468_v44 = vld [vmem:[%s3642_s6] ss:$0 sm:$0xff] (!%p577_p10)  ;;  %s3682_s26 = sld [smem:[#allocation15_spill]] (!%p577_p10)  ;;  %s2593_s19 = sshll.u32 (!%p577_p10), %s3049_s21, 7 }
  0x1e   : > { %v2476_v53 = vld [vmem:[%s3646_s10] ss:$0 sm:$0xff] (!%p577_p10) }
  0x22   : > { %s643_s29 = scalar_select %p642_p11, %s3049_s21, 1  ;;  %v2921_v14 = vld [vmem:[%s3678_s5] sm:$0xff]   ;;  %v2922_v16 = vld [vmem:[%s3678_s5 + $0x8] sm:$0xff]   ;;  %v2927_v59 = vld [vmem:[%s3678_s5 + $0x10] sm:$0xff]  }
  0x23   : > { %2669 = vmatpush3.bf16.msra.mxu0 %v2921_v14  ;;  %v2467_v26 = vld [vmem:[%s3680_s4] ss:$0 sm:$0xff]  ;;  %s3684_s4 = sld [smem:[#allocation16_spill]] }
  0x24   : > { %s2464_s2 = sshll.u32 %s643_s29, 3  ;;  %2670 = vmatprep.subr.bf16.mxu0 %v3059_v15 }
  0x25   : > { %s652_s1 = scalar_lea.vmem %s3676_s24, %s2464_s2  ;;  %s645_s18 = scalar_lea.vmem %s3677_s3, %s2464_s2 }
  0x26   : > { %v3225_v0 = vld [vmem:[%s652_s1] sm:$0xff]  ;;  %s3679_s3 = sld [smem:[#allocation12_spill]]  ;;  %s3061_s2 = smov [#allocation2]  }
  0x27   : > { %v658_v1 = vld [vmem:[%s645_s18] sm:$0xff]  ;;  %v693_v2 = vsel %vm663_vm0, %v3225_v0, 0.0  ;;  %2671 = vmatpush3.bf16.msra.mxu0 %v2922_v16  ;;  %s3681_s18 = sld [smem:[#allocation11_spill]]  ;;  %s2983_s23 = sshll.u32 %s3061_s2, 4  ;;  %s2984_s23 = int_to_ptr.vmem [resolvable:$false] %s2983_s23 }
  0x28   : > { %v664_v3 = vsel %vm663_vm0, %v658_v1, 0.0  ;;  %694 = vadd.xlane.f32.xlu0 %v693_v2  ;;  %2676 = vmatprep.subr.bf16.mxu0 %v3059_v15  ;;  %v2929_v2 = vld [vmem:[%s3645_s9 + $0x10] sm:$0xff]   ;;  %v2505_v16 = vld [vmem:[%s3646_s10 + $0x1] ss:$0 sm:$0xff] }
  0x2c   : > { %665 = vadd.xlane.f32.xlu0 %v664_v3  ;;  %v2466_v24 = vld [vmem:[%s3679_s3] ss:$0 sm:$0xff]  ;;  %v2930_v3 = vld [vmem:[%s3645_s9 + $0x18] sm:$0xff]   ;;  %s639_s3 = sand.u32 1, %s3041_s30  }
  0x2d   : > { %s2463_s29 = sshll.u32 %s639_s3, 3  ;;  %s2345_s21 = scalar_lea.sflag [#allocation3], %s639_s3 }
  0x2e   : > { %s641_s0 = scalar_lea.vmem [#allocation2], %s2463_s29 }
  0x2f   : > { %s2359_s1 = sshll.u32 %s641_s0, 4  ;;  %s3590_s1 = int_to_ptr.vmem [resolvable:$true] %s2359_s1 }
  0x30   : > { %s2979_s29 = scalar_lea.vmem %s3590_s1, 128  ;;  %p2986_p1 = scmp.lt.s32.totalorder %s3590_s1, %s2984_s23 }
  0x31   : > { %p2980_p12 = scmp.ne.s32.totalorder %s3590_s1, %s2979_s29 }
  0x33   : > { %p2981_p13 = pnand %p2980_p12, %p3202_p4 }
  0x35   : > { %p2982_p0 = pneg %p2981_p13 }
  0xb5   : > { %v695_v4 = vpop.xlane.xlu0 %694 }
  0xb6   : > { %v696_v5 = vmul.f32 0.03125, %v695_v4  ;;  %v3328_v4 = vld [vmem:[%s3681_s18] sm:$0xff] }
  0xb8   : > { %v697_v6 = vsub.f32 %v3225_v0, %v696_v5 }
  0xb9   : > { %v666_v7 = vpop.xlane.xlu0 %665 }
  0xba   : > { %v668_v8 = vmul.f32 0.03125, %v666_v7  ;;  %v698_v9 = vmul.f32 %v697_v6, %v697_v6 }
  0xbc   : > { %v669_v10 = vsub.f32 %v658_v1, %v668_v8  ;;  %v699_v11 = vsel %vm663_vm0, %v698_v9, 0.0  ;;  %v2928_v1 = vld [vmem:[%s3678_s5 + $0x18] sm:$0xff]  }
  0xbd   : > { %700 = vadd.xlane.f32.xlu1 %v699_v11 }
  0xbe   : > { %v670_v12 = vmul.f32 %v669_v10, %v669_v10 }
  0xc0   : > { %v671_v13 = vsel %vm663_vm0, %v670_v12, 0.0 }
  0xc1   : > { %672 = vadd.xlane.f32.xlu1 %v671_v13 }
 0x14a   : > { %v701_v17 = vpop.xlane.xlu1 %700 }
 0x14b   : > { %v702_v18 = vmul.f32 0.03125, %v701_v17 }
 0x14d   : > { %v703_v19 = vadd.f32 1e-05, %v702_v18 }
 0x14e   : > { %v673_v20 = vpop.xlane.xlu1 %672 }
 0x14f   : > { %2955 = vrsqrt.f32 %v703_v19  ;;  %v674_v21 = vmul.f32 0.03125, %v673_v20 }
 0x151   : > { %v675_v22 = vadd.f32 1e-05, %v674_v21 }
 0x153   : > { %2957 = vrsqrt.f32 %v675_v22 }
 0x159   : > { %v2956_v23 = vpop.eup %2955 }
 0x15a   : > { %v705_v25 = vmul.f32 %v2956_v23, %v697_v6 }
 0x15c   : > { %v706_v27 = vmul.f32 %v2466_v24, %v705_v25 }
 0x15d   : > { %v2958_v28 = vpop.eup %2957 }
 0x15e   : > { %v677_v29 = vmul.f32 %v2958_v28, %v669_v10  ;;  %v707_v30 = vadd.f32 %v2467_v26, %v706_v27 }
 0x160   : > { %v684_v32 = vmul.f32 %v2466_v24, %v677_v29  ;;  %v3256_v33 = vpack.c.bf16 %v707_v30, %v707_v30 }
 0x162   : > { %2673 = vmatmul.mubr.msk.bf16.vlgmr.msra.gmra.mrb[0].mxu0 %vm663_vm0, %v3256_v33  ;;  %v691_v35 = vadd.f32 %v2467_v26, %v684_v32  ;;  %v2931_v32 = vld [vmem:[%s3643_s7 + $0x10] sm:$0xff]  }
 0x163   : > { %2677 = vmatpush3.bf16.msra.mxu0 %v2923_v31  ;;  %2680 = vmatprep.mubr.msk.bf16.mxu0 %vm3060_vm1, %v3059_v15 }
 0x164   : > { %2678 = vmatprep.subr.bf16.mxu0 %v3059_v15  ;;  %v3269_v37 = vpack.c.bf16 %v691_v35, %v691_v35  ;;  %v2932_v35 = vld [vmem:[%s3643_s7 + $0x18] sm:$0xff]  }
 0x167   : > { %2679 = vmatpush3.bf16.msra.mxu0 %v2924_v34 }
 0x168   : > { %2684 = vmatprep.subr.bf16.mxu0 %v3059_v15 }
 0x16a   : > { %2681 = vmatmul.mubr.msk.bf16.vlgmr.msra.gmra.mrb[4].mxu0 %vm663_vm0, %v3269_v37 }
 0x16b   : > { %2685 = vmatpush3.bf16.msra.mxu0 %v2925_v36  ;;  %2688 = vmatprep.mubr.msk.bf16.mxu0 %vm3060_vm1, %v3059_v15 }
 0x16c   : > { %2686 = vmatprep.subr.bf16.mxu0 %v3059_v15 }
 0x16f   : > { %2687 = vmatpush3.bf16.msra.mxu0 %v2926_v38 }
 0x170   : > { %2698 = vmatprep.subr.bf16.mxu0 %v3059_v15 }
 0x172   : > { %2689 = vmatmul.mubr.msk.bf16.vlgmr.msra.gmra.mrb[8].mxu0 %vm663_vm0, %v3269_v37 }
 0x173   : > { %2700 = vmatprep.mubr.msk.bf16.mxu0 %vm3060_vm1, %v3059_v15 }
 0x235   : > { %v769_v39 = vpop.f32.mrb[0].mxu0 }
 0x236   : > { %v2674_v40 = vpop.f32.mrb[1].mxu0  ;;  %v770_v49 = vadd.f32 %v2468_v44, %v769_v39 }
 0x237   : > { %v772_v41 = vpop.f32.mrb[2].mxu0 }
 0x238   : > { %v2675_v42 = vpop.f32.mrb[3].mxu0  ;;  %v904_v54 = vmul.f32 0.35355338, %v770_v49  ;;  %v2496_v41 = vld [vmem:[%s3644_s8 + $0x1] ss:$0 sm:$0xff] }
 0x239   : > { %v2487_v42 = vld [vmem:[%s3642_s6 + $0x1] ss:$0 sm:$0xff] }
 0x23a   : > { %v905_v60 = vpack.c.bf16 %v904_v54, %v904_v54 }
 0x23d   : > { %v835_v45 = vpop.f32.mrb[4].mxu0 }
 0x23e   : > { %v836_v46 = vadd.f32 %v2472_v43, %v835_v45  ;;  %v2682_v47 = vpop.f32.mrb[5].mxu0 }
 0x23f   : > { %v838_v48 = vpop.f32.mrb[6].mxu0 }
 0x240   : > { %v906_v50 = vpack.c.bf16 %v836_v46, %v836_v46  ;;  %v2683_v51 = vpop.f32.mrb[7].mxu0 }
 0x242   : > { %v913_v52 = vsel %vm908_vm2, %v906_v50, 0 }
 0x243   : > { %2693 = vmatpush3.bf16.xpose.msra.mxu1 %v913_v52 }
 0x244   : > { %2704 = vmatprep.subr.bf16.mxu1 %v3059_v15 }
 0x245   : > { %v898_v55 = vpop.f32.mrb[8].mxu0 }
 0x246   : > { %v899_v56 = vadd.f32 %v2476_v53, %v898_v55  ;;  %v2690_v57 = vpop.f32.mrb[9].mxu0 }
 0x247   : > { %v901_v58 = vpop.f32.mrb[10].mxu0 }
 0x248   : > { %v907_v61 = vpack.c.bf16 %v899_v56, %v899_v56  ;;  %v2691_v62 = vpop.f32.mrb[11].mxu0 }
 0x24a   : > { %v972_v63 = vsel %vm970_vm3, %v907_v61, 0  ;;  %2695 = vmatmul.mubr.msk.bf16.vlgmr.msra.gmra.mrb[0].mxu1 %vm908_vm2, %v905_v60 }
 0x24b   : > { %2699 = vmatpush3.bf16.msra.mxu0 %v972_v63  ;;  %2705 = vmatpush3.bf16.msra.mxu1 %v2927_v59 }
 0x24c   : > { %2706 = vmatprep.subr.bf16.mxu1 %v3059_v15  ;;  %2708 = vmatprep.mubr.msk.bf16.mxu1 %vm3060_vm1, %v3059_v15 }
 0x24d   : > { %2712 = vmatprep.subr.bf16.mxu0 %v3059_v15 }
 0x24f   : > { %2707 = vmatpush3.bf16.msra.mxu1 %v2928_v1  ;;  %v2511_v1 = vld [vmem:[%s3647_s11 + $0x4] sm:$0xf] }
 0x250   : > { %2720 = vmatprep.subr.bf16.mxu1 %v3059_v15 }
 0x252   : > { %2709 = vmatmul.mubr.msk.bf16.vlgmr.msra.gmra.mrb[4].mxu1 %vm663_vm0, %v3256_v33 }
 0x253   : > { %2721 = vmatpush3.bf16.msra.mxu1 %v2929_v2  ;;  %2724 = vmatprep.mubr.msk.bf16.mxu1 %vm3060_vm1, %v3059_v15  ;;  %v1326_v2 = vsel %vm970_vm3, %v2511_v1, 0 }
 0x254   : > { %2722 = vmatprep.subr.bf16.mxu1 %v3059_v15 }
 0x257   : > { %2723 = vmatpush3.bf16.msra.mxu1 %v2930_v3 }
 0x258   : > { %2734 = vmatprep.subr.bf16.mxu1 %v3059_v15 }
 0x25a   : > { %2725 = vmatmul.mubr.msk.bf16.vlgmr.msra.gmra.mrb[8].mxu1 %vm663_vm0, %v3269_v37 }
 0x25b   : > { %2736 = vmatprep.mubr.msk.bf16.mxu1 %vm3060_vm1, %v3059_v15 }
 0x31d   : > { %v949_v5 = vpop.f32.mrb[0].mxu1 }
 0x31e   : > { %v950_v6 = vadd.f32 %v949_v5, %v3328_v4  ;;  %v2696_v7 = vpop.f32.mrb[1].mxu1 }
 0x31f   : > { %v952_v8 = vpop.f32.mrb[2].mxu1 }
 0x320   : > { %v2697_v9 = vpop.f32.mrb[3].mxu1  ;;  %v955_v10 = vsel %vm908_vm2, %v950_v6, -inf }
 0x321   : > { %956 = vmax.xlane.f32.xlu0 %v955_v10  ;;  %v2933_v10 = vld [vmem:[%s3643_s7 + $0x20] sm:$0xff]  }
 0x325   : > { %v1075_v11 = vpop.f32.mrb[4].mxu1 }
 0x326   : > { %v2710_v12 = vpop.f32.mrb[5].mxu1  ;;  %v1076_v47 = vadd.f32 %v2487_v42, %v1075_v11  ;;  %v2519_v42 = vld [vmem:[%s3642_s6 + $0x2] ss:$0 sm:$0xff] }
 0x327   : > { %v1078_v13 = vpop.f32.mrb[6].mxu1  ;;  %v2934_v12 = vld [vmem:[%s3643_s7 + $0x28] sm:$0xff]  }
 0x328   : > { %v2711_v14 = vpop.f32.mrb[7].mxu1  ;;  %v1211_v51 = vmul.f32 0.35355338, %v1076_v47 }
 0x329   : > { %v2935_v14 = vld [vmem:[%s3678_s5 + $0x20] sm:$0xff]  }
 0x32a   : > { %v1212_v52 = vpack.c.bf16 %v1211_v51, %v1211_v51 }
 0x32d   : > { %v1205_v17 = vpop.f32.mrb[8].mxu1 }
 0x32e   : > { %v1206_v18 = vadd.f32 %v2505_v16, %v1205_v17  ;;  %v2726_v19 = vpop.f32.mrb[9].mxu1 }
 0x32f   : > { %v1208_v20 = vpop.f32.mrb[10].mxu1 }
 0x330   : > { %v1214_v21 = vpack.c.bf16 %v1206_v18, %v1206_v18  ;;  %v2727_v22 = vpop.f32.mrb[11].mxu1  ;;  %v2936_v20 = vld [vmem:[%s3678_s5 + $0x28] sm:$0xff]  }
 0x331   : > { %v2937_v22 = vld [vmem:[%s3645_s9 + $0x20] sm:$0xff]  }
 0x332   : > { %v1277_v23 = vsel %vm970_vm3, %v1214_v21, 0 }
 0x333   : > { %2735 = vmatpush3.bf16.msra.mxu1 %v1277_v23 }
 0x334   : > { %2746 = vmatprep.subr.bf16.mxu1 %v3059_v15 }
 0x3ae   : > { %v957_v24 = vpop.xlane.xlu0 %956 }
 0x3af   : > { %v958_v25 = vsub.f32 %v950_v6, %v957_v24  ;;  %v1015_v6 = vld [vmem:[%s3647_s11] sm:$0xf] }
 0x3b0   : > { %v1372_v9 = vsel %vm970_vm3, %v1015_v6, 0 }
 0x3b1   : > { %v959_v26 = vmul.f32 1.442695, %v958_v25 }
 0x3b3   : > { %2959 = vpow2.f32 %v959_v26  ;;  %v2938_v26 = vld [vmem:[%s3645_s9 + $0x28] sm:$0xff]  }
 0x3bd   : > { %v2960_v27 = vpop.eup %2959 }
 0x3be   : > { %v961_v28 = vsel %vm908_vm2, %v2960_v27, 0.0 }
 0x3bf   : > { %962 = vadd.xlane.f32.xlu1 %v961_v28 }
 0x44c   : > { %v963_v29 = vpop.xlane.xlu1 %962 }
 0x44d   : > { %2961 = vrcp.f32 %v963_v29 }
 0x457   : > { %v2962_v30 = vpop.eup %2961 }
 0x458   : > { %v965_v31 = vmul.f32 %v2962_v30, %v2960_v27  ;;  %v2528_v27 = vld [vmem:[%s3644_s8 + $0x2] ss:$0 sm:$0xff] }
 0x45a   : > { %v966_v34 = vpack.c.bf16 %v965_v31, %v965_v31 }
 0x45c   : > { %2701 = vmatmul.mubr.msk.bf16.vlgmr.msra.gmra.mrb[12].mxu0 %vm908_vm2, %v966_v34 }
 0x45d   : > { %2713 = vmatpush3.bf16.msra.mxu0 %v2931_v32  ;;  %2716 = vmatprep.mubr.msk.bf16.mxu0 %vm3060_vm1, %v3059_v15 }
 0x45e   : > { %2714 = vmatprep.subr.bf16.mxu0 %v3059_v15 }
 0x461   : > { %2715 = vmatpush3.bf16.msra.mxu0 %v2932_v35 }
 0x462   : > { %2728 = vmatprep.subr.bf16.mxu0 %v3059_v15 }
 0x464   : > { %2717 = vmatmul.mubr.msk.bf16.vlgmr.msra.gmra.mrb[16].mxu0 %vm663_vm0, %v3269_v37 }
 0x465   : > { %2730 = vmatprep.mubr.msk.bf16.mxu0 %vm3060_vm1, %v3059_v15 }
 0x52f   : > { %v1008_v36 = vpop.f32.mrb[12].mxu0 }
 0x530   : > { %v2702_v38 = vpop.f32.mrb[13].mxu0  ;;  %v1014_v11 = vpack.c.bf16 %v1008_v36, %v1008_v36 }
 0x531   : > { %v1011_v39 = vpop.f32.mrb[14].mxu0 }
 0x532   : > { %v2703_v40 = vpop.f32.mrb[15].mxu0 }
 0x537   : > { %v1140_v43 = vpop.f32.mrb[16].mxu0 }
 0x538   : > { %v1141_v44 = vadd.f32 %v2496_v41, %v1140_v43  ;;  %v2718_v45 = vpop.f32.mrb[17].mxu0 }
 0x539   : > { %v1143_v46 = vpop.f32.mrb[18].mxu0 }
 0x53a   : > { %v1213_v48 = vpack.c.bf16 %v1141_v44, %v1141_v44  ;;  %v2719_v49 = vpop.f32.mrb[19].mxu0 }
 0x53c   : > { %v1219_v50 = vsel %vm908_vm2, %v1213_v48, 0 }
 0x53d   : > { %2729 = vmatpush3.bf16.xpose.msra.mxu0 %v1219_v50  ;;  %v2537_v50 = vld [vmem:[%s3646_s10 + $0x2] ss:$0 sm:$0xff] }
 0x53e   : > { %2740 = vmatprep.subr.bf16.mxu0 %v3059_v15 }
 0x544   : > { %2731 = vmatmul.mubr.msk.bf16.vlgmr.msra.gmra.mrb[20].mxu0 %vm908_vm2, %v1212_v52 }
 0x545   : > { %2742 = vmatprep.mubr.msk.bf16.mxu0 %vm3060_vm1, %v3059_v15  ;;  %2741 = vmatpush3.bf16.msra.mxu0 %v1326_v2 }
 0x546   : > { %2752 = vmatprep.subr.bf16.mxu0 %v3059_v15 }
 0x617   : > { %v1255_v53 = vpop.f32.mrb[20].mxu0 }
 0x618   : > { %v1256_v54 = vadd.f32 %v1255_v53, %v3328_v4  ;;  %v2732_v55 = vpop.f32.mrb[21].mxu0 }
 0x619   : > { %v1258_v56 = vpop.f32.mrb[22].mxu0 }
 0x61a   : > { %v2733_v57 = vpop.f32.mrb[23].mxu0  ;;  %v1261_v58 = vsel %vm908_vm2, %v1256_v54, -inf }
 0x61b   : > { %1262 = vmax.xlane.f32.xlu0 %v1261_v58 }
 0x6a8   : > { %v1263_v59 = vpop.xlane.xlu0 %1262 }
 0x6a9   : > { %v1264_v60 = vsub.f32 %v1256_v54, %v1263_v59 }
 0x6ab   : > { %v1265_v61 = vmul.f32 1.442695, %v1264_v60 }
 0x6ad   : > { %2963 = vpow2.f32 %v1265_v61 }
 0x6b7   : > { %v2964_v62 = vpop.eup %2963 }
 0x6b8   : > { %v1267_v63 = vsel %vm908_vm2, %v2964_v62, 0.0 }
 0x6b9   : > { %1268 = vadd.xlane.f32.xlu1 %v1267_v63 }
 0x746   : > { %v1269_v3 = vpop.xlane.xlu1 %1268 }
 0x747   : > { %2965 = vrcp.f32 %v1269_v3 }
 0x751   : > { %v2966_v5 = vpop.eup %2965 }
 0x752   : > { %v1271_v7 = vmul.f32 %v2966_v5, %v2964_v62 }
 0x754   : > { %v1272_v8 = vpack.c.bf16 %v1271_v7, %v1271_v7  ;;  %v2543_v7 = vld [vmem:[%s3647_s11 + $0x8] sm:$0xf] }
 0x756   : > { %2737 = vmatmul.mubr.msk.bf16.vlgmr.msra.gmra.mrb[12].mxu1 %vm908_vm2, %v1272_v8  ;;  %v1724_v8 = vsel %vm970_vm3, %v2543_v7, 0 }
 0x757   : > { %2747 = vmatpush3.bf16.msra.mxu1 %v1372_v9  ;;  %2748 = vmatprep.mubr.msk.bf16.mxu1 %vm3060_vm1, %v3059_v15 }
 0x758   : > { %2760 = vmatprep.subr.bf16.mxu1 %v3059_v15 }
 0x75e   : > { %2749 = vmatmul.mubr.msk.bf16.vlgmr.msra.gmra.mrb[16].mxu1 %vm908_vm2, %v1014_v11 }
 0x75f   : > { %2761 = vmatpush3.bf16.msra.mxu1 %v2933_v10  ;;  %2764 = vmatprep.mubr.msk.bf16.mxu1 %vm3060_vm1, %v3059_v15 }
 0x760   : > { %2762 = vmatprep.subr.bf16.mxu1 %v3059_v15 }
 0x763   : > { %2763 = vmatpush3.bf16.msra.mxu1 %v2934_v12  ;;  %v2939_v12 = vld [vmem:[%s3678_s5 + $0x30] sm:$0xff]  }
 0x764   : > { %2776 = vmatprep.subr.bf16.mxu1 %v3059_v15 }
 0x766   : > { %2765 = vmatmul.mubr.msk.bf16.vlgmr.msra.gmra.mrb[20].mxu1 %vm663_vm0, %v3269_v37 }
 0x767   : > { %2778 = vmatprep.mubr.msk.bf16.mxu1 %vm3060_vm1, %v3059_v15 }
 0x829   : > { %v1313_v13 = vpop.f32.mrb[12].mxu1 }
 0x82a   : > { %v1319_v16 = vpack.c.bf16 %v1313_v13, %v1313_v13  ;;  %v2738_v17 = vpop.f32.mrb[13].mxu1 }
 0x82b   : > { %v1316_v18 = vpop.f32.mrb[14].mxu1  ;;  %v2942_v17 = vld [vmem:[%s3645_s9 + $0x38] sm:$0xff]  }
 0x82c   : > { %v2739_v19 = vpop.f32.mrb[15].mxu1  ;;  %2743 = vmatmul.mubr.msk.bf16.vlgmr.msra.gmra.mrb[24].mxu0 %vm908_vm2, %v1319_v16  ;;  %v2941_v16 = vld [vmem:[%s3645_s9 + $0x30] sm:$0xff]  }
 0x82d   : > { %2753 = vmatpush3.bf16.msra.mxu0 %v2935_v14  ;;  %2756 = vmatprep.mubr.msk.bf16.mxu0 %vm3060_vm1, %v3059_v15  ;;  %v2940_v14 = vld [vmem:[%s3678_s5 + $0x38] sm:$0xff]   ;;  %v2943_v18 = vld [vmem:[%s3643_s7 + $0x30] sm:$0xff]   ;;  %s3588_s5 = scalar_lea.hbm %s3684_s4, %s2593_s19 }
 0x82e   : > { %2754 = vmatprep.subr.bf16.mxu0 %v3059_v15 }
 0x831   : > { %v1408_v21 = vpop.f32.mrb[16].mxu1  ;;  %2755 = vmatpush3.bf16.msra.mxu0 %v2936_v20 }
 0x832   : > { %v2750_v23 = vpop.f32.mrb[17].mxu1  ;;  %2768 = vmatprep.subr.bf16.mxu0 %v3059_v15 }
 0x833   : > { %v1411_v24 = vpop.f32.mrb[18].mxu1  ;;  %v2944_v23 = vld [vmem:[%s3643_s7 + $0x38] sm:$0xff]  }
 0x834   : > { %v2751_v25 = vpop.f32.mrb[19].mxu1  ;;  %2757 = vmatmul.mubr.msk.bf16.vlgmr.msra.gmra.mrb[28].mxu0 %vm663_vm0, %v3256_v33 }
 0x835   : > { %2769 = vmatpush3.bf16.msra.mxu0 %v2937_v22  ;;  %2772 = vmatprep.mubr.msk.bf16.mxu0 %vm3060_vm1, %v3059_v15 }
 0x836   : > { %2770 = vmatprep.subr.bf16.mxu0 %v3059_v15 }
 0x839   : > { %v1538_v28 = vpop.f32.mrb[20].mxu1  ;;  %2771 = vmatpush3.bf16.msra.mxu0 %v2938_v26 }
 0x83a   : > { %v1539_v29 = vadd.f32 %v2528_v27, %v1538_v28  ;;  %v2766_v30 = vpop.f32.mrb[21].mxu1  ;;  %2782 = vmatprep.subr.bf16.mxu0 %v3059_v15  ;;  %v2568_v28 = vld [vmem:[%s3646_s10 + $0x3] ss:$0 sm:$0xff] }
 0x83b   : > { %v1541_v31 = vpop.f32.mrb[22].mxu1 }
 0x83c   : > { %v1611_v32 = vpack.c.bf16 %v1539_v29, %v1539_v29  ;;  %v2767_v34 = vpop.f32.mrb[23].mxu1  ;;  %2773 = vmatmul.mubr.msk.bf16.vlgmr.msra.gmra.mrb[32].mxu0 %vm663_vm0, %v3269_v37 }
 0x83d   : > { %2784 = vmatprep.mubr.msk.bf16.mxu0 %vm3060_vm1, %v3059_v15 }
 0x83e   : > { %v1617_v35 = vsel %vm908_vm2, %v1611_v32, 0 }
 0x83f   : > { %2777 = vmatpush3.bf16.xpose.msra.mxu1 %v1617_v35 }
 0x840   : > { %2788 = vmatprep.subr.bf16.mxu1 %v3059_v15 }
 0x8ff   : > { %v1362_v36 = vpop.f32.mrb[24].mxu0 }
 0x900   : > { %v3427_v38 = vadd.f32 %v1408_v21, %v1362_v36  ;;  %v2744_v39 = vpop.f32.mrb[25].mxu0 }
 0x901   : > { %v1365_v40 = vpop.f32.mrb[26].mxu0 }
 0x902   : > { %v2745_v41 = vpop.f32.mrb[27].mxu0 }
 0x907   : > { %v1473_v43 = vpop.f32.mrb[28].mxu0 }
 0x908   : > { %v1474_v44 = vadd.f32 %v2519_v42, %v1473_v43  ;;  %v2758_v45 = vpop.f32.mrb[29].mxu0  ;;  %v2559_v43 = vld [vmem:[%s3644_s8 + $0x3] ss:$0 sm:$0xff] }
 0x909   : > { %v1476_v46 = vpop.f32.mrb[30].mxu0 }
 0x90a   : > { %v1609_v47 = vmul.f32 0.35355338, %v1474_v44  ;;  %v2759_v48 = vpop.f32.mrb[31].mxu0  ;;  %v2550_v44 = vld [vmem:[%s3642_s6 + $0x3] ss:$0 sm:$0xff] }
 0x90c   : > { %v1610_v49 = vpack.c.bf16 %v1609_v47, %v1609_v47 }
 0x90e   : > { %2779 = vmatmul.mubr.msk.bf16.vlgmr.msra.gmra.mrb[24].mxu1 %vm908_vm2, %v1610_v49 }
 0x90f   : > { %v1603_v51 = vpop.f32.mrb[32].mxu0  ;;  %2790 = vmatprep.mubr.msk.bf16.mxu1 %vm3060_vm1, %v3059_v15  ;;  %2789 = vmatpush3.bf16.msra.mxu1 %v1724_v8 }
 0x910   : > { %v1604_v52 = vadd.f32 %v2537_v50, %v1603_v51  ;;  %v2774_v53 = vpop.f32.mrb[33].mxu0  ;;  %2802 = vmatprep.subr.bf16.mxu1 %v3059_v15 }
 0x911   : > { %v1606_v54 = vpop.f32.mrb[34].mxu0 }
 0x912   : > { %v1612_v55 = vpack.c.bf16 %v1604_v52, %v1604_v52  ;;  %v2775_v56 = vpop.f32.mrb[35].mxu0 }
 0x914   : > { %v1675_v57 = vsel %vm970_vm3, %v1612_v55, 0 }
 0x915   : > { %2783 = vmatpush3.bf16.msra.mxu0 %v1675_v57 }
 0x916   : > { %2794 = vmatprep.subr.bf16.mxu0 %v3059_v15 }
 0x9e1   : > { %v1653_v58 = vpop.f32.mrb[24].mxu1 }
 0x9e2   : > { %v1654_v59 = vadd.f32 %v1653_v58, %v3328_v4  ;;  %v2780_v60 = vpop.f32.mrb[25].mxu1 }
 0x9e3   : > { %v1656_v61 = vpop.f32.mrb[26].mxu1 }
 0x9e4   : > { %v2781_v62 = vpop.f32.mrb[27].mxu1  ;;  %v1659_v63 = vsel %vm908_vm2, %v1654_v59, -inf }
 0x9e5   : > { %1660 = vmax.xlane.f32.xlu0 %v1659_v63 }
 0xa72   : > { %v1661_v1 = vpop.xlane.xlu0 %1660 }
 0xa73   : > { %v1662_v2 = vsub.f32 %v1654_v59, %v1661_v1 }
 0xa75   : > { %v1663_v3 = vmul.f32 1.442695, %v1662_v2  ;;  %v2574_v2 = vld [vmem:[%s3647_s11 + $0xc] sm:$0xf] }
 0xa77   : > { %2967 = vpow2.f32 %v1663_v3 }
 0xa81   : > { %v2968_v5 = vpop.eup %2967 }
 0xa82   : > { %v1665_v6 = vsel %vm908_vm2, %v2968_v5, 0.0 }
 0xa83   : > { %1666 = vadd.xlane.f32.xlu1 %v1665_v6 }
 0xb10   : > { %v1667_v9 = vpop.xlane.xlu1 %1666 }
 0xb11   : > { %2969 = vrcp.f32 %v1667_v9 }
 0xb1b   : > { %v2970_v10 = vpop.eup %2969 }
 0xb1c   : > { %v1669_v11 = vmul.f32 %v2970_v10, %v2968_v5 }
 0xb1e   : > { %v1670_v13 = vpack.c.bf16 %v1669_v11, %v1669_v11 }
 0xb20   : > { %2785 = vmatmul.mubr.msk.bf16.vlgmr.msra.gmra.mrb[36].mxu0 %vm908_vm2, %v1670_v13 }
 0xb21   : > { %2795 = vmatpush3.bf16.msra.mxu0 %v2939_v12  ;;  %2798 = vmatprep.mubr.msk.bf16.mxu0 %vm3060_vm1, %v3059_v15 }
 0xb22   : > { %2796 = vmatprep.subr.bf16.mxu0 %v3059_v15 }
 0xb25   : > { %2797 = vmatpush3.bf16.msra.mxu0 %v2940_v14  ;;  %v2576_v14 = vld [vmem:[%s3648_s12] ss:$0 sm:$0xff] }
 0xb26   : > { %2810 = vmatprep.subr.bf16.mxu0 %v3059_v15 }
 0xb28   : > { %2799 = vmatmul.mubr.msk.bf16.vlgmr.msra.gmra.mrb[40].mxu0 %vm663_vm0, %v3256_v33 }
 0xb29   : > { %2811 = vmatpush3.bf16.msra.mxu0 %v2941_v16  ;;  %2814 = vmatprep.mubr.msk.bf16.mxu0 %vm3060_vm1, %v3059_v15 }
 0xb2a   : > { %2812 = vmatprep.subr.bf16.mxu0 %v3059_v15 }
 0xb2d   : > { %2813 = vmatpush3.bf16.msra.mxu0 %v2942_v17 }
 0xb2e   : > { %2824 = vmatprep.subr.bf16.mxu0 %v3059_v15 }
 0xb30   : > { %2815 = vmatmul.mubr.msk.bf16.vlgmr.msra.gmra.mrb[44].mxu0 %vm663_vm0, %v3269_v37 }
 0xb31   : > { %2826 = vmatprep.mubr.msk.bf16.mxu0 %vm3060_vm1, %v3059_v15 }
 0xbf3   : > { %v1711_v33 = vpop.f32.mrb[36].mxu0 }
 0xbf4   : > { %v1717_v19 = vpack.c.bf16 %v1711_v33, %v1711_v33  ;;  %v2786_v20 = vpop.f32.mrb[37].mxu0 }
 0xbf5   : > { %v1714_v21 = vpop.f32.mrb[38].mxu0 }
 0xbf6   : > { %v2787_v22 = vpop.f32.mrb[39].mxu0  ;;  %2791 = vmatmul.mubr.msk.bf16.vlgmr.msra.gmra.mrb[28].mxu1 %vm908_vm2, %v1717_v19 }
 0xbf7   : > { %2803 = vmatpush3.bf16.msra.mxu1 %v2943_v18  ;;  %2806 = vmatprep.mubr.msk.bf16.mxu1 %vm3060_vm1, %v3059_v15 }
 0xbf8   : > { %2804 = vmatprep.subr.bf16.mxu1 %v3059_v15 }
 0xbfb   : > { %v1826_v24 = vpop.f32.mrb[40].mxu0  ;;  %2805 = vmatpush3.bf16.msra.mxu1 %v2944_v23 }
 0xbfc   : > { %v2800_v25 = vpop.f32.mrb[41].mxu0  ;;  %2818 = vmatprep.subr.bf16.mxu1 %v3059_v15  ;;  %v1827_v49 = vadd.f32 %v2550_v44, %v1826_v24  ;;  %v2951_v44 = vld [vmem:[%s3653_s17 + $0x20] sm:$0xff]  }
 0xbfd   : > { %v1829_v26 = vpop.f32.mrb[42].mxu0 }
 0xbfe   : > { %v2801_v27 = vpop.f32.mrb[43].mxu0  ;;  %2807 = vmatmul.mubr.msk.bf16.vlgmr.msra.gmra.mrb[32].mxu1 %vm663_vm0, %v3269_v37  ;;  %v1962_v52 = vmul.f32 0.35355338, %v1827_v49 }
 0xbff   : > { %2820 = vmatprep.mubr.msk.bf16.mxu1 %vm3060_vm1, %v3059_v15  ;;  %v2945_v27 = vld [vmem:[%s3651_s15] sm:$0xff]  }
 0xc00   : > { %v1963_v53 = vpack.c.bf16 %v1962_v52, %v1962_v52 }
 0xc03   : > { %v1956_v29 = vpop.f32.mrb[44].mxu0 }
 0xc04   : > { %v1957_v30 = vadd.f32 %v2568_v28, %v1956_v29  ;;  %v2816_v31 = vpop.f32.mrb[45].mxu0  ;;  %v2947_v28 = vld [vmem:[%s3653_s17] sm:$0xff]   ;;  %v2948_v29 = vld [vmem:[%s3653_s17 + $0x8] sm:$0xff]  }
 0xc05   : > { %v1959_v32 = vpop.f32.mrb[46].mxu0 }
 0xc06   : > { %v1965_v34 = vpack.c.bf16 %v1957_v30, %v1957_v30  ;;  %v2817_v35 = vpop.f32.mrb[47].mxu0  ;;  %v2949_v30 = vld [vmem:[%s3653_s17 + $0x10] sm:$0xff]  }
 0xc08   : > { %v2028_v36 = vsel %vm970_vm3, %v1965_v34, 0 }
 0xc09   : > { %2825 = vmatpush3.bf16.msra.mxu0 %v2028_v36  ;;  %v2577_v36 = vld [vmem:[%s3649_s13] ss:$0 sm:$0xff] }
 0xc0a   : > { %2836 = vmatprep.subr.bf16.mxu0 %v3059_v15 }
 0xcc9   : > { %v1760_v39 = vpop.f32.mrb[28].mxu1 }
 0xcca   : > { %v1766_v37 = vadd.f32 %v1760_v39, %v3427_v38  ;;  %v2792_v40 = vpop.f32.mrb[29].mxu1 }
 0xccb   : > { %v1763_v41 = vpop.f32.mrb[30].mxu1 }
 0xccc   : > { %v2793_v42 = vpop.f32.mrb[31].mxu1 }
 0xcd1   : > { %v1891_v45 = vpop.f32.mrb[32].mxu1 }
 0xcd2   : > { %v1892_v46 = vadd.f32 %v2559_v43, %v1891_v45  ;;  %v2808_v47 = vpop.f32.mrb[33].mxu1  ;;  %v2950_v43 = vld [vmem:[%s3653_s17 + $0x18] sm:$0xff]   ;;  %v2952_v45 = vld [vmem:[%s3653_s17 + $0x28] sm:$0xff]  }
 0xcd3   : > { %v1894_v48 = vpop.f32.mrb[34].mxu1  ;;  %v2954_v47 = vld [vmem:[%s3653_s17 + $0x38] sm:$0xff]  }
 0xcd4   : > { %v1964_v50 = vpack.c.bf16 %v1892_v46, %v1892_v46  ;;  %v2809_v51 = vpop.f32.mrb[35].mxu1  ;;  %v2953_v46 = vld [vmem:[%s3653_s17 + $0x30] sm:$0xff]   ;;  %v2579_v48 = vld [vmem:[%s3652_s16] ss:$0 sm:$0xff] }
 0xcd6   : > { %v1970_v38 = vsel %vm908_vm2, %v1964_v50, 0 }
 0xcd7   : > { %2819 = vmatpush3.bf16.xpose.msra.mxu1 %v1970_v38 }
 0xcd8   : > { %2830 = vmatprep.subr.bf16.mxu1 %v3059_v15 }
 0xcde   : > { %2821 = vmatmul.mubr.msk.bf16.vlgmr.msra.gmra.mrb[36].mxu1 %vm908_vm2, %v1963_v53 }
 0xcdf   : > { %2832 = vmatprep.mubr.msk.bf16.mxu1 %vm3060_vm1, %v3059_v15 }
 0xdb1   : > { %v2006_v54 = vpop.f32.mrb[36].mxu1 }
 0xdb2   : > { %v2007_v55 = vadd.f32 %v2006_v54, %v3328_v4  ;;  %v2822_v56 = vpop.f32.mrb[37].mxu1  ;;  %v2077_v4 = vsel %vm970_vm3, %v2574_v2, 0 }
 0xdb3   : > { %v2009_v57 = vpop.f32.mrb[38].mxu1  ;;  %2831 = vmatpush3.bf16.msra.mxu1 %v2077_v4 }
 0xdb4   : > { %v2823_v58 = vpop.f32.mrb[39].mxu1  ;;  %v2012_v59 = vsel %vm908_vm2, %v2007_v55, -inf  ;;  %2844 = vmatprep.subr.bf16.mxu1 %v3059_v15 }
 0xdb5   : > { %2013 = vmax.xlane.f32.xlu0 %v2012_v59  ;;  %v2583_v58 = vld [vmem:[%s3682_s26] ss:$0 sm:$0xff]  ;;  %s2985_s26 = scalar_lea.vmem %s2984_s23, 256 }
 0xdb6   : > { %p2987_p2 = scmp.lt.s32.totalorder %s2985_s26, %s2979_s29 }
 0xdb8   : > { %p2988_p3 = por %p2987_p2, %p2986_p1 }
 0xdba   : > { %p2989_p5 = pnand %p2988_p3, %p2982_p0 }
 0xe42   : > { %v2014_v60 = vpop.xlane.xlu0 %2013 }
 0xe43   : > { %v2015_v61 = vsub.f32 %v2007_v55, %v2014_v60 }
 0xe45   : > { %v2016_v62 = vmul.f32 1.442695, %v2015_v61 }
 0xe47   : > { %2971 = vpow2.f32 %v2016_v62 }
 0xe51   : > { %v2972_v63 = vpop.eup %2971 }
 0xe52   : > { %v2018_v1 = vsel %vm908_vm2, %v2972_v63, 0.0 }
 0xe53   : > { %2019 = vadd.xlane.f32.xlu1 %v2018_v1 }
 0xee0   : > { %v2020_v3 = vpop.xlane.xlu1 %2019 }
 0xee1   : > { %2973 = vrcp.f32 %v2020_v3 }
 0xeeb   : > { %v2974_v5 = vpop.eup %2973 }
 0xeec   : > { %v2022_v6 = vmul.f32 %v2974_v5, %v2972_v63 }
 0xeee   : > { %v2023_v7 = vpack.c.bf16 %v2022_v6, %v2022_v6 }
 0xef0   : > { %2827 = vmatmul.mubr.msk.bf16.vlgmr.msra.gmra.mrb[48].mxu0 %vm908_vm2, %v2023_v7 }
 0xef1   : > { %2840 = vmatprep.mubr.msk.bf16.mxu0 %vm3060_vm1, %v3059_v15  ;;  %2837 = vmatpush3.bf16.msra.mxu0 %v2945_v27 }
 0xef2   : > { %2838 = vmatprep.subr.bf16.mxu0 %v3059_v15 }
 0xfc3   : > { %v2064_v8 = vpop.f32.mrb[48].mxu0 }
 0xfc4   : > { %v2070_v9 = vpack.c.bf16 %v2064_v8, %v2064_v8  ;;  %v2828_v10 = vpop.f32.mrb[49].mxu0 }
 0xfc5   : > { %v2067_v11 = vpop.f32.mrb[50].mxu0 }
 0xfc6   : > { %v2829_v12 = vpop.f32.mrb[51].mxu0  ;;  %2833 = vmatmul.mubr.msk.bf16.vlgmr.msra.gmra.mrb[40].mxu1 %vm908_vm2, %v2070_v9 }
 0xfc7   : > { %2860 = vmatprep.mubr.msk.bf16.mxu1 %vm3060_vm1, %v3059_v15  ;;  %2845 = vmatpush3.bf16.msra.mxu1 %v2947_v28 }
 0xfc8   : > { %2846 = vmatprep.subr.bf16.mxu1 %v3059_v15 }
 0xfcb   : > { %2847 = vmatpush3.bf16.msra.mxu1 %v2948_v29 }
 0xfcc   : > { %2848 = vmatprep.subr.bf16.mxu1 %v3059_v15 }
 0xfcf   : > { %2849 = vmatpush3.bf16.msra.mxu1 %v2949_v30 }
 0xfd0   : > { %2850 = vmatprep.subr.bf16.mxu1 %v3059_v15 }
 0xfd3   : > { %2851 = vmatpush3.bf16.msra.mxu1 %v2950_v43 }
 0xfd4   : > { %2852 = vmatprep.subr.bf16.mxu1 %v3059_v15 }
 0xfd7   : > { %2853 = vmatpush3.bf16.msra.mxu1 %v2951_v44 }
 0xfd8   : > { %2854 = vmatprep.subr.bf16.mxu1 %v3059_v15 }
 0xfdb   : > { %2855 = vmatpush3.bf16.msra.mxu1 %v2952_v45 }
 0xfdc   : > { %2856 = vmatprep.subr.bf16.mxu1 %v3059_v15 }
 0xfdf   : > { %2857 = vmatpush3.bf16.msra.mxu1 %v2953_v46 }
 0xfe0   : > { %2858 = vmatprep.subr.bf16.mxu1 %v3059_v15 }
 0xfe3   : > { %2859 = vmatpush3.bf16.msra.mxu1 %v2954_v47 }
0x1099   : > { %v2113_v13 = vpop.f32.mrb[40].mxu1 }
0x109a   : > { %v2119_v16 = vadd.f32 %v2113_v13, %v1766_v37  ;;  %v2834_v17 = vpop.f32.mrb[41].mxu1  ;;  %v2578_v37 = vld [vmem:[%s3650_s14] ss:$0 sm:$0xff] }
0x109b   : > { %v2116_v33 = vpop.f32.mrb[42].mxu1 }
0x109c   : > { %v2127_v18 = vadd.f32 %v2576_v14, %v2119_v16  ;;  %v2835_v19 = vpop.f32.mrb[43].mxu1 }
0x109e   : > { %v3525_v20 = vadd.f32 %v2127_v18, %v3225_v0  ;;  %v2946_v0 = vld [vmem:[%s3651_s15 + $0x8] sm:$0xff]  }
0x109f   : > { %2839 = vmatpush3.bf16.msra.mxu0 %v2946_v0 }
0x10a0   : > { %v2131_v21 = vsel %vm663_vm0, %v3525_v20, 0.0 }
0x10a1   : > { %2132 = vadd.xlane.f32.xlu0 %v2131_v21 }
0x112e   : > { %v2133_v22 = vpop.xlane.xlu0 %2132 }
0x112f   : > { %v2134_v23 = vmul.f32 0.03125, %v2133_v22 }
0x1131   : > { %v2135_v24 = vsub.f32 %v3525_v20, %v2134_v23 }
0x1133   : > { %v2136_v25 = vmul.f32 %v2135_v24, %v2135_v24 }
0x1135   : > { %v2137_v26 = vsel %vm663_vm0, %v2136_v25, 0.0 }
0x1136   : > { %2138 = vadd.xlane.f32.xlu1 %v2137_v26 }
0x11c3   : > { %v2139_v31 = vpop.xlane.xlu1 %2138 }
0x11c4   : > { %v2140_v32 = vmul.f32 0.03125, %v2139_v31 }
0x11c6   : > { %v2141_v34 = vadd.f32 1e-05, %v2140_v32 }
0x11c8   : > { %2975 = vrsqrt.f32 %v2141_v34 }
0x11d2   : > { %v2976_v35 = vpop.eup %2975 }
0x11d3   : > { %v2143_v39 = vmul.f32 %v2976_v35, %v2135_v24 }
0x11d5   : > { %v2150_v40 = vmul.f32 %v2577_v36, %v2143_v39 }
0x11d7   : > { %v2157_v41 = vadd.f32 %v2578_v37, %v2150_v40 }
0x11d9   : > { %v2158_v42 = vpack.c.bf16 %v2157_v41, %v2157_v41 }
0x11db   : > { %2841 = vmatmul.mubr.msk.bf16.vlgmr.msra.gmra.mrb[52].mxu0 %vm663_vm0, %v2158_v42 }
0x12ae   : > { %v2219_v49 = vpop.f32.mrb[52].mxu0 }
0x12af   : > { %v2220_v50 = vadd.f32 %v2579_v48, %v2219_v49  ;;  %v2842_v51 = vpop.f32.mrb[53].mxu0 }
0x12b0   : > { %v2222_v38 = vpop.f32.mrb[54].mxu0 }
0x12b1   : > { %v2226_v52 = vmul.f32 0.70710677, %v2220_v50  ;;  %v2843_v53 = vpop.f32.mrb[55].mxu0  ;;  %v2225_v15 = vmul.f32 0.5, %v2220_v50 }
0x12b3   : > { %2977 = verf.f32 %v2226_v52 }
0x12bd   : > { %v2978_v54 = vpop.eup %2977 }
0x12be   : > { %v2228_v55 = vadd.f32 1.0, %v2978_v54 }
0x12c0   : > { %v2229_v56 = vmul.f32 %v2228_v55, %v2225_v15 }
0x12c2   : > { %v2230_v57 = vpack.c.bf16 %v2229_v56, %v2229_v56 }
0x12c4   : > { %2861 = vmatmul.mubr.bf16.vlgmr.msra.gmra.mrb[44].mxu1 %v2230_v57 }
0x1397   : > { %v2336_v59 = vpop.f32.mrb[44].mxu1 }
0x1398   : > { %v2337_v60 = vadd.f32 %v2583_v58, %v2336_v59  ;;  %v2862_v61 = vpop.f32.mrb[45].mxu1 }
0x1399   : > { %v2339_v62 = vpop.f32.mrb[46].mxu1 }
0x139a   : > { %v2342_v63 = vadd.f32 %v2337_v60, %v3525_v20  ;;  %v2863_v1 = vpop.f32.mrb[47].mxu1 }
0x139c   : > { %2343 = vst.msk [vmem:[%s641_s0] sm:$0xff] %vm663_vm0, %v2342_v63 }
0x139d   : > { %2992 = shalt.err (!%p2989_p5)
}
0x139e   : > { %s2993_s3 = scalar_lea.hbm %s3588_s5, 128  ;;  %s2997_s24 = scalar_lea.hbm %s3684_s4, 256 }
0x139f   : > { %p2994_p6 = scmp.ne.s32.totalorder %s3588_s5, %s2993_s3  ;;  %p2998_p10 = scmp.lt.u32.totalorder %s3588_s5, %s3684_s4 }
0x13a0   : > { %p2999_p11 = scmp.lt.u32.totalorder %s2997_s24, %s2993_s3  ;;  %p3001_p13 = scmp.lt.u32.totalorder %s2993_s3, %s3588_s5 }
0x13a1   : > { %p2995_p7 = pnand %p2994_p6, %p3202_p4 }
0x13a2   : > { %p3000_p12 = por %p2999_p11, %p2998_p10 }
0x13a3   : > { %p2996_p9 = pneg %p2995_p7 }
0x13a4   : > { %p3002_p0 = por %p3001_p13, %p3000_p12 }
0x13a6   : > { %p3003_p1 = pnand %p3002_p0, %p2996_p9 }
0x13a8   : > { %3006 = shalt.err (!%p3003_p1)
}
0x13a9   : > { %2864 = dma.vmem_to_hbm [thread:$0]  (%p3202_p4), %s3590_s1, 128, %s3588_s5, %s2345_s21  }
0x13aa PF: > { %s3685_s29 = sld [smem:[#allocation5_spill]]  ;;  %p2870_p2 = scmp.ge.s32.totalorder %s3057_s22, 2 }
0x13ac   : > { %p2867_p3 = pnand %p2870_p2, %p3209_p8 }
0x13b0   : > { %s2371_s23 = sand.u32 1, %s3685_s29  }
0x13b1   : > { %s2372_s26 = scalar_lea.sflag [#allocation3], %s2371_s23 }
0x13b2   : > { %3032 = dma.done.wait (!%p2867_p3), %s2372_s26, 128  }
0x13b3   : > { %3034 = vsyncadd (!%p2867_p3), %s2372_s26, 4294967168  ;;  %s32_s22 = sadd.s32 1, %s3057_s22   ;;  %s3686_s21 = sld [smem:[#allocation6_spill]] }
0x13b4   : > { %p29_p5 = scmp.ge.s32.totalorder %s32_s22, 4   ;;  %s3687_s1 = sld [smem:[#allocation7_spill]] }
0x13b5   : > { %s3688_s0 = smov %s3041_s30  ;;  %s3689_s30 = smov %s3045_s20 }
0x13b6   : > { %s3690_s20 = smov %s3215_s28  ;;  %31 = sbr.rel (!%p29_p5) target bundleno = 13 (0xd), region = 158 }
0x13bd   :  { %2377 = vsyncpa [#allocation3], 1 }
0x13be   :  { %2379 = vsyncpa [#allocation3 + $0x1], 1 }

</bundles_post_ra>
